<compile_context>
chip_gen: v6e
topology: v6e:2x2x1
jax: 0.10.0
libtpu: 0.0.40
codegen_flags: <defaults>
</compile_context>

<pallas_src>
import functools

import jax
import jax.numpy as jnp
from jax.experimental import pallas as pl
from jax.experimental.pallas import tpu as pltpu

NUM_FTRS = 1280          # efficientnet_b0 classifier[1].in_features
STEM_CH = 32             # efficientnet_b0 stem output channels
RGB_HID = 64
FUSE_HID = 128
KSIZE = 3                # stem conv kernel size
STRIDE = 2
PAD = 1
PATCH_K = KSIZE * KSIZE * 3   # 27
ROW_BUDGET = 8192             # stem-matmul rows (TB*ts) per grid step


def _silu(y):
    # y * sigmoid(y) == y * (0.5*tanh(y/2) + 0.5): single EUP op per element.
    return y * (0.5 * jnp.tanh(0.5 * y) + 0.5)


# ---------------------------------------------------------------------------
# Fused kernel: stem conv tile -> pooled partial sums -> (last tile) batched
# head projection + fusion MLP for TB images at once.
# ---------------------------------------------------------------------------
def _fused_kernel(patches_ref, rgbc_ref, w_stem_ref, w_head_ref,
                  w2f_ref, w3_ref, b3_ref, o_ref, acc_ref, *, inv_spatial):
    j = pl.program_id(1)
    nj = pl.num_programs(1)
    tb, ts, _ = patches_ref.shape

    @pl.when(j == 0)
    def _():
        acc_ref[...] = jnp.zeros_like(acc_ref)

    # ---- stem conv tile: ONE MXU matmul, M = TB*ts (bf16 -> f32 acc) --------
    p2 = patches_ref[...].reshape(tb * ts, PATCH_K)
    y = jnp.dot(p2, w_stem_ref[...],
                preferred_element_type=jnp.float32)              # (TB*ts, 32)
    y = _silu(y)

    # ---- global-average-pool partial sums: VALU vreg adds only --------------
    # (TB, ts//8, 8, 32): axis=1 sum adds whole (8,32) vreg tiles; the lone
    # cross-sublane reduce happens once per image block in the epilogue.
    acc_ref[...] += jnp.sum(y.reshape(tb, ts // 8, 8, STEM_CH), axis=1)

    # ---- last spatial tile: pool -> head proj+SiLU -> fusion MLP (M = TB) ---
    @pl.when(j == nj - 1)
    def _():
        pooled = jnp.sum(acc_ref[...], axis=1) * inv_spatial     # (TB, 32) f32
        feat = _silu(jnp.dot(pooled.astype(jnp.bfloat16), w_head_ref[...],
                             preferred_element_type=jnp.float32))  # (TB, 1280)

        # concat([feat, rgb_hidden]) @ W2  ==  feat @ W2_feat + rgb_contrib,
        # rgb_contrib = relu(rgb@W1+b1)@W2_rgb + b2 precomputed in XLA glue.
        h = jnp.dot(feat.astype(jnp.bfloat16), w2f_ref[...],
                    preferred_element_type=jnp.float32) + rgbc_ref[...]
        h = jnp.maximum(h, 0.0)                                  # fusion ReLU
        # Dropout(0.1) / Dropout(0.2) are identities in eval mode.

        # W3 zero-padded to (128,128): lane-dense unmasked (TB,128) store;
        # column 0 carries the regression output.
        out = jnp.dot(h.astype(jnp.bfloat16), w3_ref[...],
                      preferred_element_type=jnp.float32) + b3_ref[...]
        o_ref[...] = out.astype(o_ref.dtype)


def fused_forward(patches, rgb_contrib, params_mx, *, tb, ts, n_spatial):
    """patches: (N_pad, S_pad, 27) bf16; rgb_contrib: (N_pad, 128) f32."""
    n_pad, s_pad, pk = patches.shape
    n_tiles = s_pad // ts
    kern = functools.partial(_fused_kernel, inv_spatial=1.0 / float(n_spatial))

    # TODO(synk): if xprof shows exposed DMA at image-block boundaries, add
    # pipeline_mode=pl.Buffered(3) on the patches BlockSpec.
    return pl.pallas_call(
        kern,
        out_shape=jax.ShapeDtypeStruct((n_pad, FUSE_HID), jnp.float32),
        grid_spec=pltpu.PrefetchScalarGridSpec(
            num_scalar_prefetch=0,
            grid=(n_pad // tb, n_tiles),
            in_specs=[
                pl.BlockSpec((tb, ts, pk), lambda i, j: (i, j, 0)),       # patches
                pl.BlockSpec((tb, FUSE_HID), lambda i, j: (i, 0)),        # rgb_contrib
                pl.BlockSpec((pk, STEM_CH), lambda i, j: (0, 0)),         # w_stem
                pl.BlockSpec((STEM_CH, NUM_FTRS), lambda i, j: (0, 0)),   # w_head
                pl.BlockSpec((NUM_FTRS, FUSE_HID), lambda i, j: (0, 0)),  # w2_feat
                pl.BlockSpec((FUSE_HID, FUSE_HID), lambda i, j: (0, 0)),  # w3 (padded)
                pl.BlockSpec((1, FUSE_HID), lambda i, j: (0, 0)),         # b3 (padded)
            ],
            out_specs=pl.BlockSpec((tb, FUSE_HID), lambda i, j: (i, 0)),
            scratch_shapes=[pltpu.VMEM((tb, 8, STEM_CH), jnp.float32)],
        ),
        compiler_params=pltpu.CompilerParams(
            dimension_semantics=("parallel", "arbitrary"),
            vmem_limit_bytes=40 * 1024 * 1024,   # fits v7x's 64 MiB physical
        ),
    )(patches, rgb_contrib,
      params_mx["w_stem"], params_mx["w_head"], params_mx["w2_feat"],
      params_mx["w3_pad"], params_mx["b3_pad"])


# ---------------------------------------------------------------------------
# JAX glue
# ---------------------------------------------------------------------------
def im2col_nhwc(x_nhwc, k=KSIZE, stride=STRIDE, pad=PAD):
    # TODO(synk): the 3x3/s2 window gather is XLA glue (materializes k*k taps
    # in HBM); an in-kernel strided-window DMA over the padded NHWC image
    # would remove that extra HBM round trip entirely.
    x = jnp.pad(x_nhwc, ((0, 0), (pad, pad), (pad, pad), (0, 0)))
    x = x.astype(jnp.bfloat16)   # cast before gather: halves the patches stream
    n, h, w, c = x.shape
    ho = (h - k) // stride + 1
    wo = (w - k) // stride + 1
    taps = []
    for di in range(k):
        for dj in range(k):
            taps.append(x[:, di:di + stride * ho:stride,
                          dj:dj + stride * wo:stride, :])
    p = jnp.stack(taps, axis=-2)                      # (N, Ho, Wo, k*k, C)
    return p.reshape(n, ho * wo, k * k * c), ho, wo


def _pick_tb(n):
    # Prefer >=2 image blocks so the "parallel" batch axis shards across v7x's
    # two TensorCores; TB >= 8 keeps the epilogue matmuls sublane-dense.
    for tb in (32, 16, 8):
        if n >= 2 * tb:
            return tb
    return 8


def init_params(key):
    ks = jax.random.split(key, 8)

    def w(k, shape, scale=0.05):
        return (scale * jax.random.normal(k, shape)).astype(jnp.float32)

    return {
        # backbone stem conv 3x3x3 -> 32, laid out as (k*k*Cin, 32)
        "w_stem": w(ks[0], (PATCH_K, STEM_CH)),
        # backbone head projection 32 -> 1280 (1x1 conv after global pool)
        "w_head": w(ks[1], (STEM_CH, NUM_FTRS)),
        # rgb_fc: Linear(3, 64)
        "w1": w(ks[2], (3, RGB_HID)),
        "b1": jnp.zeros((1, RGB_HID), jnp.float32),
        # fusion_fc[0]: Linear(1280 + 64, 128), split by input source
        "w2_feat": w(ks[3], (NUM_FTRS, FUSE_HID)),
        "w2_rgb": w(ks[4], (RGB_HID, FUSE_HID)),
        "b2": jnp.zeros((1, FUSE_HID), jnp.float32),
        # fusion_fc[3]: Linear(128, 1)
        "w3": w(ks[5], (FUSE_HID, 1)),
        "b3": jnp.zeros((1, 1), jnp.float32),
    }


@jax.jit
def ph_regression_forward(x_image_nchw, x_rgb, params):
    # NCHW (PyTorch) -> NHWC for the kernel pipeline.
    x_nhwc = jnp.transpose(x_image_nchw, (0, 2, 3, 1)).astype(jnp.float32)
    n = x_nhwc.shape[0]

    patches, ho, wo = im2col_nhwc(x_nhwc)
    s_total = ho * wo

    # Tiling: TB images x ts spatial rows per grid step (~ROW_BUDGET stem rows
    # per step amortizes per-step overhead and MXU fill/drain).
    tb = _pick_tb(n)
    n_pad = -(-n // tb) * tb
    ts = min(max(8, (ROW_BUDGET // tb) // 8 * 8), -(-s_total // 8) * 8)
    s_pad = -(-s_total // ts) * ts

    # Zero padding (spatial + batch) is harmless: the stem is bias-free so
    # padded rows give SiLU(0) = 0 and we divide by the true spatial size;
    # padded images are sliced off at the end.
    patches = jnp.pad(patches, ((0, n_pad - n), (0, s_pad - s_total), (0, 0)))

    # rgb branch hoisted out of the kernel (tiny K=3 math; XLA overlaps it
    # with the Pallas call): rgb_contrib = relu(rgb@W1 + b1) @ W2_rgb + b2.
    rgb = x_rgb.astype(jnp.float32)
    h_rgb = jnp.maximum(rgb @ params["w1"] + params["b1"], 0.0)
    rgb_contrib = h_rgb @ params["w2_rgb"] + params["b2"]          # (N, 128)
    rgb_contrib = jnp.pad(rgb_contrib, ((0, n_pad - n), (0, 0)))

    params_mx = {
        "w_stem": params["w_stem"].astype(jnp.bfloat16),
        "w_head": params["w_head"].astype(jnp.bfloat16),
        "w2_feat": params["w2_feat"].astype(jnp.bfloat16),
        # zero-pad the 1-wide final linear to 128 lanes (unmasked output store)
        "w3_pad": jnp.pad(params["w3"],
                          ((0, 0), (0, FUSE_HID - 1))).astype(jnp.bfloat16),
        "b3_pad": jnp.pad(params["b3"], ((0, 0), (0, FUSE_HID - 1))),
    }

    out = fused_forward(patches, rgb_contrib, params_mx,
                        tb=tb, ts=ts, n_spatial=s_total)
    return out[:n, :1]


if __name__ == "__main__":
    key = jax.random.PRNGKey(0)
    k_img, k_rgb, k_par = jax.random.split(key, 3)

    x_image = jax.random.normal(k_img, (2, 3, 16, 16), jnp.float32)  # NCHW
    x_rgb = jax.random.uniform(k_rgb, (2, 3), jnp.float32)

    params = init_params(k_par)

    out = ph_regression_forward(x_image, x_rgb, params)
    jax.block_until_ready(out)
    assert out.shape == (2, 1), out.shape
    print("KERNEL_OK")
</pallas_src>

<mosaic_0001>
module attributes {stable_mosaic.version = 11 : i64} {
  func.func @_fused_kernel(%arg0: i32, %arg1: i32, %arg2: memref<8x64x27xbf16, #tpu.memory_space<vmem>>, %arg3: memref<8x128xf32, #tpu.memory_space<vmem>>, %arg4: memref<27x32xbf16, #tpu.memory_space<vmem>>, %arg5: memref<32x1280xbf16, #tpu.memory_space<vmem>>, %arg6: memref<1280x128xbf16, #tpu.memory_space<vmem>>, %arg7: memref<128x128xbf16, #tpu.memory_space<vmem>>, %arg8: memref<1x128xf32, #tpu.memory_space<vmem>>, %arg9: memref<8x128xf32, #tpu.memory_space<vmem>>, %arg10: memref<8x8x32xf32, #tpu.memory_space<vmem>>) attributes {dimension_semantics = [#tpu.dimension_semantics<parallel>, #tpu.dimension_semantics<arbitrary>], iteration_bounds = array<i64: 1, 1>, scalar_prefetch = 0 : i64, scratch_operands = 1 : i64, tpu.core_type = #tpu.core_type<tc>, window_params = [{transform_indices = @transform_0, window_bounds = array<i64: 8, 64, 27>}, {transform_indices = @transform_1, window_bounds = array<i64: 8, 128>}, {pipeline_mode = #tpu.pipeline_mode<synchronous>, transform_indices = @transform_2, window_bounds = array<i64: 27, 32>}, {pipeline_mode = #tpu.pipeline_mode<synchronous>, transform_indices = @transform_3, window_bounds = array<i64: 32, 1280>}, {pipeline_mode = #tpu.pipeline_mode<synchronous>, transform_indices = @transform_4, window_bounds = array<i64: 1280, 128>}, {pipeline_mode = #tpu.pipeline_mode<synchronous>, transform_indices = @transform_5, window_bounds = array<i64: 128, 128>}, {pipeline_mode = #tpu.pipeline_mode<synchronous>, transform_indices = @transform_6, window_bounds = array<i64: 1, 128>}, {transform_indices = @transform_7, window_bounds = array<i64: 8, 128>}]} {
    %c0_i32 = arith.constant 0 : i32
    %0 = arith.cmpi eq, %arg1, %c0_i32 : i32
    %1 = arith.extui %0 : i1 to i32
    %c0_i32_0 = arith.constant 0 : i32
    %2 = arith.cmpi ne, %1, %c0_i32_0 : i32
    scf.if %2 {
      %cst_17 = arith.constant 0.000000e+00 : f32
      %23 = vector.broadcast %cst_17 : f32 to vector<8x8x32xf32>
      %c0_18 = arith.constant 0 : index
      %c0_19 = arith.constant 0 : index
      %c0_20 = arith.constant 0 : index
      %24 = vector.load %arg10[%c0_18, %c0_19, %c0_20] : memref<8x8x32xf32, #tpu.memory_space<vmem>>, vector<8x8x32xf32>
      tpu.vector_store %arg10[%c0_18, %c0_19, %c0_20], %23 {strides = array<i32>} : memref<8x8x32xf32, #tpu.memory_space<vmem>>, vector<8x8x32xf32>,
    } else {
    }
    %c0 = arith.constant 0 : index
    %c0_1 = arith.constant 0 : index
    %c0_2 = arith.constant 0 : index
    %3 = vector.load %arg2[%c0, %c0_1, %c0_2] : memref<8x64x27xbf16, #tpu.memory_space<vmem>>, vector<8x64x27xbf16>
    %4 = vector.shape_cast %3 : vector<8x64x27xbf16> to vector<512x27xbf16>
    %c0_3 = arith.constant 0 : index
    %c0_4 = arith.constant 0 : index
    %5 = vector.load %arg4[%c0_3, %c0_4] : memref<27x32xbf16, #tpu.memory_space<vmem>>, vector<27x32xbf16>
    %cst = arith.constant dense<0.000000e+00> : vector<512x32xf32>
    %6 = tpu.matmul %4, %5, %cst {dimension_numbers = #tpu.dot_dimension_numbers<[1], [0], [0], [1], [0, 0, 1, 1], [], []>} : vector<512x27xbf16>, vector<27x32xbf16>, vector<512x32xf32> -> vector<512x32xf32>
    %cst_5 = arith.constant 5.000000e-01 : f32
    %7 = vector.broadcast %cst_5 : f32 to vector<512x32xf32>
    %8 = arith.mulf %7, %6 : vector<512x32xf32>
    %9 = math.tanh %8 : vector<512x32xf32>
    %cst_6 = arith.constant 5.000000e-01 : f32
    %10 = vector.broadcast %cst_6 : f32 to vector<512x32xf32>
    %11 = arith.mulf %10, %9 : vector<512x32xf32>
    %cst_7 = arith.constant 5.000000e-01 : f32
    %12 = vector.broadcast %cst_7 : f32 to vector<512x32xf32>
    %13 = arith.addf %11, %12 : vector<512x32xf32>
    %14 = arith.mulf %6, %13 : vector<512x32xf32>
    %c0_8 = arith.constant 0 : index
    %c0_9 = arith.constant 0 : index
    %c0_10 = arith.constant 0 : index
    %15 = vector.load %arg10[%c0_8, %c0_9, %c0_10] : memref<8x8x32xf32, #tpu.memory_space<vmem>>, vector<8x8x32xf32>
    %16 = vector.shape_cast %14 : vector<512x32xf32> to vector<8x8x8x32xf32>
    %cst_11 = arith.constant dense<0.000000e+00> : vector<8x8x32xf32>
    %17 = vector.multi_reduction <add>, %16, %cst_11 [1] : vector<8x8x8x32xf32> to vector<8x8x32xf32>
    %18 = arith.addf %15, %17 : vector<8x8x32xf32>
    %c0_12 = arith.constant 0 : index
    %c0_13 = arith.constant 0 : index
    %c0_14 = arith.constant 0 : index
    %19 = vector.load %arg10[%c0_12, %c0_13, %c0_14] : memref<8x8x32xf32, #tpu.memory_space<vmem>>, vector<8x8x32xf32>
    tpu.vector_store %arg10[%c0_12, %c0_13, %c0_14], %18 {strides = array<i32>} : memref<8x8x32xf32, #tpu.memory_space<vmem>>, vector<8x8x32xf32>,
    %c0_i32_15 = arith.constant 0 : i32
    %20 = arith.cmpi eq, %arg1, %c0_i32_15 : i32
    %21 = arith.extui %20 : i1 to i32
    %c0_i32_16 = arith.constant 0 : i32
    %22 = arith.cmpi ne, %21, %c0_i32_16 : i32
    scf.if %22 {
      %c0_17 = arith.constant 0 : index
      %c0_18 = arith.constant 0 : index
      %c0_19 = arith.constant 0 : index
      %23 = vector.load %arg10[%c0_17, %c0_18, %c0_19] : memref<8x8x32xf32, #tpu.memory_space<vmem>>, vector<8x8x32xf32>
      %cst_20 = arith.constant dense<0.000000e+00> : vector<8x32xf32>
      %24 = vector.multi_reduction <add>, %23, %cst_20 [1] : vector<8x8x32xf32> to vector<8x32xf32>
      %cst_21 = arith.constant 1.562500e-02 : f32
      %25 = vector.broadcast %cst_21 : f32 to vector<8x32xf32>
      %26 = arith.mulf %24, %25 : vector<8x32xf32>
      %27 = arith.truncf %26 : vector<8x32xf32> to vector<8x32xbf16>
      %c0_22 = arith.constant 0 : index
      %c0_23 = arith.constant 0 : index
      %28 = vector.load %arg5[%c0_22, %c0_23] : memref<32x1280xbf16, #tpu.memory_space<vmem>>, vector<32x1280xbf16>
      %cst_24 = arith.constant dense<0.000000e+00> : vector<8x1280xf32>
      %29 = tpu.matmul %27, %28, %cst_24 {dimension_numbers = #tpu.dot_dimension_numbers<[1], [0], [0], [1], [0, 0, 1, 1], [], []>} : vector<8x32xbf16>, vector<32x1280xbf16>, vector<8x1280xf32> -> vector<8x1280xf32>
      %cst_25 = arith.constant 5.000000e-01 : f32
      %30 = vector.broadcast %cst_25 : f32 to vector<8x1280xf32>
      %31 = arith.mulf %30, %29 : vector<8x1280xf32>
      %32 = math.tanh %31 : vector<8x1280xf32>
      %cst_26 = arith.constant 5.000000e-01 : f32
      %33 = vector.broadcast %cst_26 : f32 to vector<8x1280xf32>
      %34 = arith.mulf %33, %32 : vector<8x1280xf32>
      %cst_27 = arith.constant 5.000000e-01 : f32
      %35 = vector.broadcast %cst_27 : f32 to vector<8x1280xf32>
      %36 = arith.addf %34, %35 : vector<8x1280xf32>
      %37 = arith.mulf %29, %36 : vector<8x1280xf32>
      %38 = arith.truncf %37 : vector<8x1280xf32> to vector<8x1280xbf16>
      %c0_28 = arith.constant 0 : index
      %c0_29 = arith.constant 0 : index
      %39 = vector.load %arg6[%c0_28, %c0_29] : memref<1280x128xbf16, #tpu.memory_space<vmem>>, vector<1280x128xbf16>
      %cst_30 = arith.constant dense<0.000000e+00> : vector<8x128xf32>
      %40 = tpu.matmul %38, %39, %cst_30 {dimension_numbers = #tpu.dot_dimension_numbers<[1], [0], [0], [1], [0, 0, 1, 1], [], []>} : vector<8x1280xbf16>, vector<1280x128xbf16>, vector<8x128xf32> -> vector<8x128xf32>
      %c0_31 = arith.constant 0 : index
      %c0_32 = arith.constant 0 : index
      %41 = vector.load %arg3[%c0_31, %c0_32] : memref<8x128xf32, #tpu.memory_space<vmem>>, vector<8x128xf32>
      %42 = arith.addf %40, %41 : vector<8x128xf32>
      %cst_33 = arith.constant 0.000000e+00 : f32
      %43 = vector.broadcast %cst_33 : f32 to vector<8x128xf32>
      %44 = arith.maximumf %42, %43 : vector<8x128xf32>
      %45 = arith.truncf %44 : vector<8x128xf32> to vector<8x128xbf16>
      %c0_34 = arith.constant 0 : index
      %c0_35 = arith.constant 0 : index
      %46 = vector.load %arg7[%c0_34, %c0_35] : memref<128x128xbf16, #tpu.memory_space<vmem>>, vector<128x128xbf16>
      %cst_36 = arith.constant dense<0.000000e+00> : vector<8x128xf32>
      %47 = tpu.matmul %45, %46, %cst_36 {dimension_numbers = #tpu.dot_dimension_numbers<[1], [0], [0], [1], [0, 0, 1, 1], [], []>} : vector<8x128xbf16>, vector<128x128xbf16>, vector<8x128xf32> -> vector<8x128xf32>
      %c0_37 = arith.constant 0 : index
      %c0_38 = arith.constant 0 : index
      %48 = vector.load %arg8[%c0_37, %c0_38] : memref<1x128xf32, #tpu.memory_space<vmem>>, vector<1x128xf32>
      %49 = vector.broadcast %48 : vector<1x128xf32> to vector<8x128xf32>
      %50 = arith.addf %47, %49 : vector<8x128xf32>
      %c0_39 = arith.constant 0 : index
      %c0_40 = arith.constant 0 : index
      %51 = vector.load %arg9[%c0_39, %c0_40] : memref<8x128xf32, #tpu.memory_space<vmem>>, vector<8x128xf32>
      tpu.vector_store %arg9[%c0_39, %c0_40], %50 {strides = array<i32>} : memref<8x128xf32, #tpu.memory_space<vmem>>, vector<8x128xf32>,
    } else {
    }
    return
  }
  func.func @transform_0(%arg0: i32, %arg1: i32) -> (i32, i32, i32) {
    %c0_i32 = arith.constant 0 : i32
    %c0_i32_0 = arith.constant 0 : i32
    return %arg0, %arg1, %c0_i32 : i32, i32, i32
  }
  func.func @transform_1(%arg0: i32, %arg1: i32) -> (i32, i32) {
    %c0_i32 = arith.constant 0 : i32
    %c0_i32_0 = arith.constant 0 : i32
    return %arg0, %c0_i32 : i32, i32
  }
  func.func @transform_2(%arg0: i32, %arg1: i32) -> (i32, i32) {
    %c0_i32 = arith.constant 0 : i32
    %c0_i32_0 = arith.constant 0 : i32
    %c0_i32_1 = arith.constant 0 : i32
    return %c0_i32, %c0_i32_0 : i32, i32
  }
  func.func @transform_3(%arg0: i32, %arg1: i32) -> (i32, i32) {
    %c0_i32 = arith.constant 0 : i32
    %c0_i32_0 = arith.constant 0 : i32
    %c0_i32_1 = arith.constant 0 : i32
    return %c0_i32, %c0_i32_0 : i32, i32
  }
  func.func @transform_4(%arg0: i32, %arg1: i32) -> (i32, i32) {
    %c0_i32 = arith.constant 0 : i32
    %c0_i32_0 = arith.constant 0 : i32
    %c0_i32_1 = arith.constant 0 : i32
    return %c0_i32, %c0_i32_0 : i32, i32
  }
  func.func @transform_5(%arg0: i32, %arg1: i32) -> (i32, i32) {
    %c0_i32 = arith.constant 0 : i32
    %c0_i32_0 = arith.constant 0 : i32
    %c0_i32_1 = arith.constant 0 : i32
    return %c0_i32, %c0_i32_0 : i32, i32
  }
  func.func @transform_6(%arg0: i32, %arg1: i32) -> (i32, i32) {
    %c0_i32 = arith.constant 0 : i32
    %c0_i32_0 = arith.constant 0 : i32
    %c0_i32_1 = arith.constant 0 : i32
    return %c0_i32, %c0_i32_0 : i32, i32
  }
  func.func @transform_7(%arg0: i32, %arg1: i32) -> (i32, i32) {
    %c0_i32 = arith.constant 0 : i32
    %c0_i32_0 = arith.constant 0 : i32
    return %arg0, %c0_i32 : i32, i32
  }
}

</mosaic_0001>

<bundles_post_ra>
// kernel: ph_regression_forward.1
= control target key start
LH: loop header
LB: loop body
LE: loop exit
PB: predicated region body
PF: predicated region fallthrough
CT: control target
= control target key end

     0   :  { %vm376_vm0 = vcmask 1044480   ;;  %vm377_vm1 = vcmask 1045504   ;;  %v3323_v1 = vmov 65535   ;;  %vm279_vm2 = vcmask 220160   ;;  %s4221_s2 = inlined_call_operand.vmem [shape: bf16[27,32], index: 2, kind: input, shape index: {}]   ;;  %s4222_s0 = inlined_call_operand.vmem [shape: bf16[8,64,27], index: 0, kind: input, shape index: {}]   ;;  %s4223_s3 = inlined_call_operand.vmem [shape: bf16[32,1280], index: 3, kind: input, shape index: {}]   ;;  %s4224_s4 = inlined_call_operand.vmem [shape: bf16[1280,128], index: 4, kind: input, shape index: {}]   ;;  %s4225_s5 = inlined_call_operand.vmem [shape: bf16[128,128], index: 5, kind: input, shape index: {}]   ;;  %s4226_s1 = inlined_call_operand.vmem [shape: f32[8,128], index: 1, kind: input, shape index: {}]   ;;  %s4227_s6 = inlined_call_operand.vmem [shape: f32[1,128], index: 6, kind: input, shape index: {}]   ;;  %s4228_s7 = inlined_call_operand.vmem [shape: f32[8,128], index: 7, kind: output, shape index: {}]  }
   0x1   :  { %v3023_v0 = vld [vmem:[%s4221_s2 + $0x8] sm:$0x3f]   ;;  %v378_v2 = vsel %vm376_vm0, 4294967295, %v3323_v1  ;;  %v3025_v4 = vld [vmem:[%s4222_s0] sm:$0xff]   ;;  %v3027_v8 = vld [vmem:[%s4222_s0 + $0x10] sm:$0xff]   ;;  %vm31_vm3 = vcmask 261120  }
   0x2   :  { %v379_v3 = vsel %vm377_vm1, %v378_v2, 0  ;;  %v3024_v6 = vld [vmem:[%s4221_s2] sm:$0xff]   ;;  %2935 = vmatprep.mubr.msk.bf16.mxu0 %vm279_vm2, %v3025_v4  ;;  %v3026_v7 = vld [vmem:[%s4222_s0 + $0x8] sm:$0xff]   ;;  %v3028_v9 = vld [vmem:[%s4222_s0 + $0x18] sm:$0xff]   ;;  %v3324_v34 = vmov 0.0   ;;  %vm1256_vm4 = vcmask 1041409  }
   0x3   :  { %v381_v5 = vand.u32 %v3023_v0, %v379_v3  ;;  %v3029_v10 = vld [vmem:[%s4222_s0 + $0x20] sm:$0xff]   ;;  %v3030_v11 = vld [vmem:[%s4222_s0 + $0x28] sm:$0xff]   ;;  %v3031_v12 = vld [vmem:[%s4222_s0 + $0x30] sm:$0xff]   ;;  %32 = vst.msk [vmem:[#allocation2] sm:$0xff] %vm31_vm3, %v3324_v34  ;;  %vm1258_vm5 = vcmask 1042434   ;;  %vm1260_vm6 = vcmask 1043459  }
   0x4   :  { %v3032_v13 = vld [vmem:[%s4222_s0 + $0x38] sm:$0xff]   ;;  %v3033_v14 = vld [vmem:[%s4222_s0 + $0x40] sm:$0xff]   ;;  %v3034_v15 = vld [vmem:[%s4222_s0 + $0x48] sm:$0xff]   ;;  %33 = vst.msk [vmem:[#allocation2 + $0x8] sm:$0xff] %vm31_vm3, %v3324_v34  ;;  %vm1262_vm7 = vcmask 1044484   ;;  %vm1264_vm8 = vcmask 1045509  }
   0x5   :  { %2931 = vmatprep.subr.bf16.mxu0 %v381_v5  ;;  %v3035_v16 = vld [vmem:[%s4222_s0 + $0x50] sm:$0xff]   ;;  %v3036_v17 = vld [vmem:[%s4222_s0 + $0x58] sm:$0xff]   ;;  %v3037_v18 = vld [vmem:[%s4222_s0 + $0x60] sm:$0xff]   ;;  %34 = vst.msk [vmem:[#allocation2 + $0x10] sm:$0xff] %vm31_vm3, %v3324_v34  ;;  %vm1266_vm9 = vcmask 1046534   ;;  %vm1268_vm10 = vcmask 1047559  }
   0x6   :  { %2932 = vmatpush3.bf16.msra.mxu0 %v381_v5  ;;  %v3038_v19 = vld [vmem:[%s4222_s0 + $0x68] sm:$0xff]   ;;  %v3039_v20 = vld [vmem:[%s4222_s0 + $0x70] sm:$0xff]   ;;  %v3040_v21 = vld [vmem:[%s4222_s0 + $0x78] sm:$0xff]   ;;  %35 = vst.msk [vmem:[#allocation2 + $0x18] sm:$0xff] %vm31_vm3, %v3324_v34  ;;  %vm3326_vm11 = vmmov 0  }
   0x7   :  { %2933 = vmatprep.subr.bf16.mxu0 %v3024_v6  ;;  %v3041_v22 = vld [vmem:[%s4222_s0 + $0x80] sm:$0xff]   ;;  %v3042_v23 = vld [vmem:[%s4222_s0 + $0x88] sm:$0xff]   ;;  %v3043_v24 = vld [vmem:[%s4222_s0 + $0x90] sm:$0xff]   ;;  %36 = vst.msk [vmem:[#allocation2 + $0x20] sm:$0xff] %vm31_vm3, %v3324_v34 }
   0x8   :  { %v3044_v25 = vld [vmem:[%s4222_s0 + $0x98] sm:$0xff]   ;;  %v3045_v26 = vld [vmem:[%s4222_s0 + $0xa0] sm:$0xff]   ;;  %v3046_v27 = vld [vmem:[%s4222_s0 + $0xa8] sm:$0xff]   ;;  %37 = vst.msk [vmem:[#allocation2 + $0x28] sm:$0xff] %vm31_vm3, %v3324_v34 }
   0x9   :  { %v3047_v28 = vld [vmem:[%s4222_s0 + $0xb0] sm:$0xff]   ;;  %v3048_v29 = vld [vmem:[%s4222_s0 + $0xb8] sm:$0xff]   ;;  %v3049_v30 = vld [vmem:[%s4222_s0 + $0xc0] sm:$0xff]   ;;  %38 = vst.msk [vmem:[#allocation2 + $0x30] sm:$0xff] %vm31_vm3, %v3324_v34 }
   0xa   :  { %2934 = vmatpush3.bf16.msra.mxu0 %v3024_v6  ;;  %v3050_v31 = vld [vmem:[%s4222_s0 + $0xc8] sm:$0xff]   ;;  %v3051_v32 = vld [vmem:[%s4222_s0 + $0xd0] sm:$0xff]   ;;  %v3052_v33 = vld [vmem:[%s4222_s0 + $0xd8] sm:$0xff]   ;;  %39 = vst.msk [vmem:[#allocation2 + $0x38] sm:$0xff] %vm31_vm3, %v3324_v34 }
   0xb   :  { %v3053_v35 = vld [vmem:[%s4222_s0 + $0xe0] sm:$0xff]   ;;  %v3054_v36 = vld [vmem:[%s4222_s0 + $0xe8] sm:$0xff]   ;;  %v3055_v37 = vld [vmem:[%s4222_s0 + $0xf0] sm:$0xff]  }
   0xc   :  { %v3056_v38 = vld [vmem:[%s4222_s0 + $0xf8] sm:$0xff]  }
   0xd   :  { %2936 = vmatmul.mubr.msk.bf16.vlgmr.msra.gmra.mxu0 %vm279_vm2, %v3026_v7 }
   0xe   :  { %2939 = vmatprep.mubr.msk.bf16.mxu0 %vm279_vm2, %v3027_v8 }
  0x15   :  { %2940 = vmatmul.mubr.msk.bf16.gmra.mxu0 %vm279_vm2, %v3028_v9 }
  0x16   :  { %2943 = vmatprep.mubr.msk.bf16.mxu0 %vm279_vm2, %v3029_v10 }
  0x1d   :  { %2944 = vmatmul.mubr.msk.bf16.gmra.mxu0 %vm279_vm2, %v3030_v11 }
  0x1e   :  { %2947 = vmatprep.mubr.msk.bf16.mxu0 %vm279_vm2, %v3031_v12 }
  0x25   :  { %2948 = vmatmul.mubr.msk.bf16.gmra.mxu0 %vm279_vm2, %v3032_v13 }
  0x26   :  { %2951 = vmatprep.mubr.msk.bf16.mxu0 %vm279_vm2, %v3033_v14 }
  0x2d   :  { %2952 = vmatmul.mubr.msk.bf16.gmra.mxu0 %vm279_vm2, %v3034_v15 }
  0x2e   :  { %2955 = vmatprep.mubr.msk.bf16.mxu0 %vm279_vm2, %v3035_v16 }
  0x35   :  { %2956 = vmatmul.mubr.msk.bf16.gmra.mxu0 %vm279_vm2, %v3036_v17 }
  0x36   :  { %2959 = vmatprep.mubr.msk.bf16.mxu0 %vm279_vm2, %v3037_v18 }
  0x3d   :  { %2960 = vmatmul.mubr.msk.bf16.gmra.mxu0 %vm279_vm2, %v3038_v19 }
  0x3e   :  { %2963 = vmatprep.mubr.msk.bf16.mxu0 %vm279_vm2, %v3039_v20 }
  0x45   :  { %2964 = vmatmul.mubr.msk.bf16.gmra.mxu0 %vm279_vm2, %v3040_v21 }
  0x46   :  { %2967 = vmatprep.mubr.msk.bf16.mxu0 %vm279_vm2, %v3041_v22 }
  0x4d   :  { %2968 = vmatmul.mubr.msk.bf16.gmra.mxu0 %vm279_vm2, %v3042_v23 }
  0x4e   :  { %2971 = vmatprep.mubr.msk.bf16.mxu0 %vm279_vm2, %v3043_v24 }
  0x55   :  { %2972 = vmatmul.mubr.msk.bf16.gmra.mxu0 %vm279_vm2, %v3044_v25 }
  0x56   :  { %2975 = vmatprep.mubr.msk.bf16.mxu0 %vm279_vm2, %v3045_v26 }
  0x5d   :  { %2976 = vmatmul.mubr.msk.bf16.gmra.mxu0 %vm279_vm2, %v3046_v27 }
  0x5e   :  { %2979 = vmatprep.mubr.msk.bf16.mxu0 %vm279_vm2, %v3047_v28 }
  0x65   :  { %2980 = vmatmul.mubr.msk.bf16.gmra.mxu0 %vm279_vm2, %v3048_v29 }
  0x66   :  { %2983 = vmatprep.mubr.msk.bf16.mxu0 %vm279_vm2, %v3049_v30 }
  0x6d   :  { %2984 = vmatmul.mubr.msk.bf16.gmra.mxu0 %vm279_vm2, %v3050_v31 }
  0x6e   :  { %2987 = vmatprep.mubr.msk.bf16.mxu0 %vm279_vm2, %v3051_v32 }
  0x75   :  { %2988 = vmatmul.mubr.msk.bf16.gmra.mxu0 %vm279_vm2, %v3052_v33 }
  0x76   :  { %2991 = vmatprep.mubr.msk.bf16.mxu0 %vm279_vm2, %v3053_v35 }
  0x7d   :  { %2992 = vmatmul.mubr.msk.bf16.gmra.mxu0 %vm279_vm2, %v3054_v36 }
  0x7e   :  { %2995 = vmatprep.mubr.msk.bf16.mxu0 %vm279_vm2, %v3055_v37 }
  0x85   :  { %2996 = vmatmul.mubr.msk.bf16.gmra.mxu0 %vm279_vm2, %v3056_v38 }
  0xcd   :  { %v2937_v39 = vpop.f32.mrf.mxu0 }
  0xce   :  { %v674_v40 = vmul.f32 0.5, %v2937_v39 }
  0xcf   :  { %v417_v41 = vpop.f32.mrf.mxu0 }
  0xd0   :  { %3175 = vtanh.f32 %v674_v40  ;;  %v672_v42 = vmul.f32 0.5, %v417_v41 }
  0xd1   :  { %v2938_v43 = vpop.f32.mrf.mxu0 }
  0xd2   :  { %3177 = vtanh.f32 %v672_v42  ;;  %v675_v44 = vmul.f32 0.5, %v2938_v43 }
  0xd3   :  { %v420_v45 = vpop.f32.mrf.mxu0 }
  0xd4   :  { %3179 = vtanh.f32 %v675_v44  ;;  %v673_v46 = vmul.f32 0.5, %v420_v45 }
  0xd5   :  { %v3517_v47 = vpop.f32.mrf.mxu0 }
  0xd6   :  { %3181 = vtanh.f32 %v673_v46  ;;  %v678_v48 = vmul.f32 0.5, %v3517_v47  ;;  %v3059_v46 = vld [vmem:[%s4223_s3 + $0x50] ss:$40 sps:$4 sm:$0xff]  }
  0xd7   :  { %v433_v49 = vpop.f32.mrf.mxu0 }
  0xd8   :  { %3183 = vtanh.f32 %v678_v48  ;;  %v676_v50 = vmul.f32 0.5, %v433_v49  ;;  %v3325_v48 = vmov 0  }
  0xd9   :  { %v3520_v51 = vpop.f32.mrf.mxu0  ;;  %1406 = vmatprep.mubr.bf16.mxu1 %v3325_v48 }
  0xda   :  { %3185 = vtanh.f32 %v676_v50  ;;  %v679_v52 = vmul.f32 0.5, %v3520_v51 }
  0xdb   :  { %v3523_v53 = vpop.f32.mrf.mxu0 }
  0xdc   :  { %3187 = vtanh.f32 %v679_v52  ;;  %v677_v54 = vmul.f32 0.5, %v3523_v53 }
  0xdd   :  { %v3176_v55 = vpop.eup %3175  ;;  %v3526_v56 = vpop.f32.mrf.mxu0 }
  0xde   :  { %3189 = vtanh.f32 %v677_v54  ;;  %v682_v57 = vmul.f32 0.5, %v3526_v56  ;;  %v802_v60 = vmul.f32 0.5, %v3176_v55  ;;  %v3060_v55 = vld [vmem:[%s4223_s3 + $0x4] ss:$40 sps:$4 sm:$0xff]  }
  0xdf   :  { %v3178_v58 = vpop.eup %3177  ;;  %v3529_v59 = vpop.f32.mrf.mxu0 }
  0xe0   :  { %v800_v61 = vmul.f32 0.5, %v3178_v58  ;;  %v680_v62 = vmul.f32 0.5, %v3529_v59  ;;  %3191 = vtanh.f32 %v682_v57  ;;  %v866_v6 = vadd.f32 0.5, %v802_v60  ;;  %v3062_v57 = vld [vmem:[%s4223_s3] ss:$40 sps:$4 sm:$0xff]  }
  0xe1   :  { %v3180_v63 = vpop.eup %3179  ;;  %v3532_v0 = vpop.f32.mrf.mxu0 }
  0xe2   :  { %v864_v1 = vadd.f32 0.5, %v800_v61  ;;  %v803_v2 = vmul.f32 0.5, %v3180_v63  ;;  %3193 = vtanh.f32 %v680_v62  ;;  %v683_v4 = vmul.f32 0.5, %v3532_v0 }
  0xe3   :  { %v3182_v3 = vpop.eup %3181  ;;  %v3535_v5 = vpop.f32.mrf.mxu0  ;;  %v930_v17 = vmul.f32 %v2937_v39, %v866_v6 }
  0xe4   :  { %v801_v7 = vmul.f32 0.5, %v3182_v3  ;;  %v928_v9 = vmul.f32 %v864_v1, %v417_v41  ;;  %3195 = vtanh.f32 %v683_v4  ;;  %v681_v10 = vmul.f32 0.5, %v3535_v5  ;;  %v3057_v41 = vld [vmem:[%s4223_s3 + $0x54] ss:$40 sps:$4 sm:$0xff]  }
  0xe5   :  { %v3184_v8 = vpop.eup %3183  ;;  %v3538_v11 = vpop.f32.mrf.mxu0  ;;  %v867_v12 = vadd.f32 0.5, %v803_v2  ;;  %v1004_v33 = vsel %vm31_vm3, %v930_v17, 0.0  ;;  %1386 = vmatprep.subr.bf16.mxu1 %v3057_v41 }
  0xe6   :  { %v865_v13 = vadd.f32 0.5, %v801_v7  ;;  %3197 = vtanh.f32 %v681_v10  ;;  %v686_v15 = vmul.f32 0.5, %v3538_v11  ;;  %v806_v19 = vmul.f32 0.5, %v3184_v8  ;;  %1387 = vmatpush1.bf16.msra.mxu1 %v3059_v46 }
  0xe7   :  { %v3186_v14 = vpop.eup %3185  ;;  %v3541_v16 = vpop.f32.mrf.mxu0  ;;  %v1001_v22 = vsel %vm31_vm3, %v928_v9, 0.0  ;;  %v931_v25 = vmul.f32 %v2938_v43, %v867_v12  ;;  %1388 = vmatprep.subr.bf16.mxu1 %v3060_v55 }
  0xe8   :  { %v929_v18 = vmul.f32 %v865_v13, %v420_v45  ;;  %v804_v20 = vmul.f32 0.5, %v3186_v14  ;;  %3199 = vtanh.f32 %v686_v15  ;;  %v684_v23 = vmul.f32 0.5, %v3541_v16 }
  0xe9   :  { %v3188_v21 = vpop.eup %3187  ;;  %v3545_v24 = vpop.f32.mrf.mxu0  ;;  %v870_v35 = vadd.f32 0.5, %v806_v19  ;;  %v1006_v43 = vsel %vm31_vm3, %v931_v25, 0.0 }
  0xea   :  { %v1002_v26 = vsel %vm31_vm3, %v929_v18, 0.0  ;;  %v868_v27 = vadd.f32 0.5, %v804_v20  ;;  %v807_v28 = vmul.f32 0.5, %v3188_v21  ;;  %3201 = vtanh.f32 %v684_v23  ;;  %1389 = vmatpush1.bf16.msra.mxu1 %v3062_v57  ;;  %v992_v21 = vld [vmem:[#allocation2] sm:$0xff] }
  0xeb   :  { %v3190_v29 = vpop.eup %3189  ;;  %v1003_v30 = vadd.f32 %v1002_v26, %v1001_v22  ;;  %v687_v31 = vmul.f32 0.5, %v3545_v24  ;;  %v3549_v32 = vpop.f32.mrf.mxu0  ;;  %v934_v58 = vmul.f32 %v3517_v47, %v870_v35 }
  0xec   :  { %v932_v36 = vmul.f32 %v868_v27, %v433_v49  ;;  %v805_v37 = vmul.f32 0.5, %v3190_v29  ;;  %v685_v39 = vmul.f32 0.5, %v3549_v32  ;;  %v871_v44 = vadd.f32 0.5, %v807_v28 }
  0xed   :  { %v1005_v38 = vadd.f32 %v1004_v33, %v1003_v30  ;;  %3203 = vtanh.f32 %v687_v31  ;;  %v3553_v40 = vpop.f32.mrf.mxu0  ;;  %v3192_v42 = vpop.eup %3191  ;;  %v1012_v13 = vsel %vm31_vm3, %v934_v58, 0.0 }
  0xee   :  { %v869_v45 = vadd.f32 0.5, %v805_v37  ;;  %3205 = vtanh.f32 %v685_v39  ;;  %v690_v52 = vmul.f32 0.5, %v3553_v40  ;;  %v1008_v60 = vsel %vm31_vm3, %v932_v36, 0.0 }
  0xef   :  { %v3194_v49 = vpop.eup %3193  ;;  %v1007_v50 = vadd.f32 %v1006_v43, %v1005_v38  ;;  %v3564_v54 = vpop.f32.mrf.mxu0  ;;  %v810_v1 = vmul.f32 0.5, %v3192_v42  ;;  %v935_v6 = vmul.f32 %v3520_v51, %v871_v44 }
  0xf0   :  { %v933_v61 = vmul.f32 %v869_v45, %v3523_v53  ;;  %v808_v62 = vmul.f32 0.5, %v3194_v49  ;;  %3207 = vtanh.f32 %v690_v52  ;;  %v688_v2 = vmul.f32 0.5, %v3564_v54 }
  0xf1   :  { %v1009_v63 = vadd.f32 %v1008_v60, %v1007_v50  ;;  %v3576_v3 = vpop.f32.mrf.mxu0  ;;  %v3196_v4 = vpop.eup %3195  ;;  %v874_v17 = vadd.f32 0.5, %v810_v1  ;;  %v1014_v20 = vsel %vm31_vm3, %v935_v6, 0.0 }
  0xf2   :  { %v1010_v7 = vsel %vm31_vm3, %v933_v61, 0.0  ;;  %v691_v47 = vmul.f32 0.5, %v3576_v3  ;;  %v872_v9 = vadd.f32 0.5, %v808_v62  ;;  %v811_v53 = vmul.f32 0.5, %v3196_v4 }
  0xf3   :  { %v1011_v8 = vadd.f32 %v1010_v7, %v1009_v63  ;;  %3209 = vtanh.f32 %v688_v2  ;;  %v3581_v10 = vpop.f32.mrf.mxu0  ;;  %v3198_v12 = vpop.eup %3197  ;;  %v938_v33 = vmul.f32 %v3526_v56, %v874_v17 }
  0xf4   :  { %3211 = vtanh.f32 %v691_v47  ;;  %v689_v14 = vmul.f32 0.5, %v3581_v10  ;;  %v809_v51 = vmul.f32 0.5, %v3198_v12  ;;  %v936_v25 = vmul.f32 %v872_v9, %v3529_v59 }
  0xf5   :  { %v1013_v15 = vadd.f32 %v1012_v13, %v1011_v8  ;;  %v3585_v18 = vpop.f32.mrf.mxu0  ;;  %v3200_v19 = vpop.eup %3199  ;;  %v875_v26 = vadd.f32 0.5, %v811_v53  ;;  %v1019_v50 = vsel %vm31_vm3, %v938_v33, 0.0 }
  0xf6   :  { %3213 = vtanh.f32 %v689_v14  ;;  %v694_v22 = vmul.f32 0.5, %v3585_v18  ;;  %v873_v27 = vadd.f32 0.5, %v809_v51  ;;  %v814_v36 = vmul.f32 0.5, %v3200_v19 }
  0xf7   :  { %v1015_v23 = vadd.f32 %v1014_v20, %v1013_v15  ;;  %v3590_v28 = vpop.f32.mrf.mxu0  ;;  %v3202_v29 = vpop.eup %3201  ;;  %v1016_v41 = vsel %vm31_vm3, %v936_v25, 0.0  ;;  %v939_v42 = vmul.f32 %v3532_v0, %v875_v26 }
  0xf8   :  { %3215 = vtanh.f32 %v694_v22  ;;  %v692_v30 = vmul.f32 0.5, %v3590_v28  ;;  %v937_v35 = vmul.f32 %v873_v27, %v3535_v5  ;;  %v812_v39 = vmul.f32 0.5, %v3202_v29 }
  0xf9   :  { %v1121_v31 = vadd.f32 %v1015_v23, %v992_v21  ;;  %v3595_v37 = vpop.f32.mrf.mxu0  ;;  %v878_v52 = vadd.f32 0.5, %v814_v36  ;;  %v1021_v62 = vsel %vm31_vm3, %v939_v42, 0.0 }
  0xfa   :  { %v3204_v38 = vpop.eup %3203  ;;  %3217 = vtanh.f32 %v692_v30  ;;  %v695_v59 = vmul.f32 0.5, %v3595_v37  ;;  %v1017_v43 = vsel %vm31_vm3, %v937_v35, 0.0  ;;  %v876_v46 = vadd.f32 0.5, %v812_v39  ;;  %v993_v39 = vld [vmem:[#allocation2 + $0x8] sm:$0xff] }
  0xfb   :  { %1129 = vst.msk [vmem:[#allocation2] sm:$0xff] %vm31_vm3, %v1121_v31  ;;  %v815_v44 = vmul.f32 0.5, %v3204_v38  ;;  %v3602_v56 = vpop.f32.mrf.mxu0  ;;  %v3206_v5 = vpop.eup %3205  ;;  %v1018_v45 = vadd.f32 %v1017_v43, %v1016_v41  ;;  %v942_v9 = vmul.f32 %v3538_v11, %v878_v52 }
  0xfc   :  { %3219 = vtanh.f32 %v695_v59  ;;  %v693_v49 = vmul.f32 0.5, %v3602_v56  ;;  %v813_v55 = vmul.f32 0.5, %v3206_v5  ;;  %v940_v0 = vmul.f32 %v876_v46, %v3541_v16 }
  0xfd   :  { %v3606_v57 = vpop.f32.mrf.mxu0  ;;  %v3208_v58 = vpop.eup %3207  ;;  %v1020_v60 = vadd.f32 %v1019_v50, %v1018_v45  ;;  %v879_v63 = vadd.f32 0.5, %v815_v44  ;;  %v1027_v27 = vsel %vm31_vm3, %v942_v9, 0.0 }
  0xfe   :  { %3221 = vtanh.f32 %v693_v49  ;;  %v698_v61 = vmul.f32 0.5, %v3606_v57  ;;  %v877_v1 = vadd.f32 0.5, %v813_v55  ;;  %v818_v2 = vmul.f32 0.5, %v3208_v58 }
  0xff   :  { %v3611_v4 = vpop.f32.mrf.mxu0  ;;  %v1022_v7 = vadd.f32 %v1021_v62, %v1020_v60  ;;  %v1023_v16 = vsel %vm31_vm3, %v940_v0, 0.0  ;;  %v943_v19 = vmul.f32 %v3545_v24, %v879_v63 }
 0x100   :  { %v3210_v6 = vpop.eup %3209  ;;  %3223 = vtanh.f32 %v698_v61  ;;  %v696_v47 = vmul.f32 0.5, %v3611_v4  ;;  %v941_v53 = vmul.f32 %v877_v1, %v3549_v32  ;;  %v882_v21 = vadd.f32 0.5, %v818_v2 }
 0x101   :  { %v3212_v8 = vpop.eup %3211  ;;  %v816_v12 = vmul.f32 0.5, %v3210_v6  ;;  %v3617_v13 = vpop.f32.mrf.mxu0  ;;  %v1024_v14 = vadd.f32 %v1023_v16, %v1022_v7  ;;  %v1029_v38 = vsel %vm31_vm3, %v943_v19, 0.0 }
 0x102   :  { %v819_v15 = vmul.f32 0.5, %v3212_v8  ;;  %3225 = vtanh.f32 %v696_v47  ;;  %v699_v17 = vmul.f32 0.5, %v3617_v13  ;;  %v1025_v20 = vsel %vm31_vm3, %v941_v53, 0.0 }
 0x103   :  { %v3214_v51 = vpop.eup %3213  ;;  %v880_v22 = vadd.f32 0.5, %v816_v12  ;;  %v3622_v11 = vpop.f32.mrf.mxu0  ;;  %v1026_v23 = vadd.f32 %v1025_v20, %v1024_v14  ;;  %v946_v43 = vmul.f32 %v3553_v40, %v882_v21  ;;  %v3065_v40 = vld [vmem:[%s4223_s3 + $0x5c] ss:$40 sps:$4 sm:$0xff]  }
 0x104   :  { %v883_v25 = vadd.f32 0.5, %v819_v15  ;;  %v817_v32 = vmul.f32 0.5, %v3214_v51  ;;  %3227 = vtanh.f32 %v699_v17  ;;  %v697_v30 = vmul.f32 0.5, %v3622_v11  ;;  %1427 = vmatprep.subr.bf16.mxu1 %v3065_v40 }
 0x105   :  { %v3216_v26 = vpop.eup %3215  ;;  %v944_v29 = vmul.f32 %v880_v22, %v3564_v54  ;;  %v3627_v31 = vpop.f32.mrf.mxu0  ;;  %v1028_v24 = vadd.f32 %v1027_v27, %v1026_v23  ;;  %v1034_v63 = vsel %vm31_vm3, %v946_v43, 0.0 }
 0x106   :  { %v881_v33 = vadd.f32 0.5, %v817_v32  ;;  %v822_v35 = vmul.f32 0.5, %v3216_v26  ;;  %3229 = vtanh.f32 %v697_v30  ;;  %v702_v59 = vmul.f32 0.5, %v3627_v31 }
 0x107   :  { %v3218_v36 = vpop.eup %3217  ;;  %v3631_v41 = vpop.f32.mrf.mxu0  ;;  %v1030_v42 = vadd.f32 %v1029_v38, %v1028_v24  ;;  %v947_v54 = vmul.f32 %v3576_v3, %v883_v25  ;;  %v1031_v45 = vsel %vm31_vm3, %v944_v29, 0.0 }
 0x108   :  { %v945_v44 = vmul.f32 %v881_v33, %v3581_v10  ;;  %v820_v46 = vmul.f32 0.5, %v3218_v36  ;;  %3231 = vtanh.f32 %v702_v59  ;;  %v700_v49 = vmul.f32 0.5, %v3631_v41 }
 0x109   :  { %v3220_v5 = vpop.eup %3219  ;;  %v3638_v50 = vpop.f32.mrf.mxu0  ;;  %v1122_v52 = vadd.f32 %v1030_v42, %v993_v39  ;;  %v886_v58 = vadd.f32 0.5, %v822_v35  ;;  %v1036_v9 = vsel %vm31_vm3, %v947_v54, 0.0  ;;  %v994_v54 = vld [vmem:[#allocation2 + $0x10] sm:$0xff] }
 0x10a   :  { %v1032_v55 = vsel %vm31_vm3, %v945_v44, 0.0  ;;  %v823_v60 = vmul.f32 0.5, %v3220_v5  ;;  %v884_v0 = vadd.f32 0.5, %v820_v46  ;;  %3233 = vtanh.f32 %v700_v49 }
 0x10b   :  { %v3222_v3 = vpop.eup %3221  ;;  %v1033_v10 = vadd.f32 %v1032_v55, %v1031_v45  ;;  %v703_v61 = vmul.f32 0.5, %v3638_v50  ;;  %v3645_v62 = vpop.f32.mrf.mxu0  ;;  %1130 = vst.msk [vmem:[#allocation2 + $0x8] sm:$0xff] %vm31_vm3, %v1122_v52  ;;  %v950_v14 = vmul.f32 %v3585_v18, %v886_v58 }
 0x10c   :  { %v821_v1 = vmul.f32 0.5, %v3222_v3  ;;  %v701_v2 = vmul.f32 0.5, %v3645_v62  ;;  %v948_v47 = vmul.f32 %v884_v0, %v3590_v28  ;;  %v887_v16 = vadd.f32 0.5, %v823_v60 }
 0x10d   :  { %v3224_v6 = vpop.eup %3223  ;;  %v1035_v7 = vadd.f32 %v1034_v63, %v1033_v10  ;;  %3235 = vtanh.f32 %v703_v61  ;;  %v3651_v8 = vpop.f32.mrf.mxu0  ;;  %v1042_v35 = vsel %vm31_vm3, %v950_v14, 0.0 }
 0x10e   :  { %v885_v53 = vadd.f32 0.5, %v821_v1  ;;  %3237 = vtanh.f32 %v701_v2  ;;  %v706_v17 = vmul.f32 0.5, %v3651_v8  ;;  %v1038_v19 = vsel %vm31_vm3, %v948_v47, 0.0 }
 0x10f   :  { %v3226_v12 = vpop.eup %3225  ;;  %v1037_v15 = vadd.f32 %v1036_v9, %v1035_v7  ;;  %v3656_v51 = vpop.f32.mrf.mxu0  ;;  %v826_v20 = vmul.f32 0.5, %v3224_v6  ;;  %v951_v18 = vmul.f32 %v3595_v37, %v887_v16 }
 0x110   :  { %v949_v28 = vmul.f32 %v885_v53, %v3602_v56  ;;  %v824_v21 = vmul.f32 0.5, %v3226_v12  ;;  %3239 = vtanh.f32 %v706_v17  ;;  %v704_v25 = vmul.f32 0.5, %v3656_v51 }
 0x111   :  { %v3228_v22 = vpop.eup %3227  ;;  %v1039_v23 = vadd.f32 %v1038_v19, %v1037_v15  ;;  %v3661_v32 = vpop.f32.mrf.mxu0  ;;  %v890_v36 = vadd.f32 0.5, %v826_v20  ;;  %v1044_v43 = vsel %vm31_vm3, %v951_v18, 0.0 }
 0x112   :  { %v1040_v26 = vsel %vm31_vm3, %v949_v28, 0.0  ;;  %v888_v27 = vadd.f32 0.5, %v824_v21  ;;  %v827_v30 = vmul.f32 0.5, %v3228_v22  ;;  %3241 = vtanh.f32 %v704_v25 }
 0x113   :  { %v1041_v29 = vadd.f32 %v1040_v26, %v1039_v23  ;;  %v707_v24 = vmul.f32 0.5, %v3661_v32  ;;  %v3666_v56 = vpop.f32.mrf.mxu0  ;;  %v3230_v33 = vpop.eup %3229  ;;  %v954_v58 = vmul.f32 %v3606_v57, %v890_v36 }
 0x114   :  { %v705_v38 = vmul.f32 0.5, %v3666_v56  ;;  %v825_v59 = vmul.f32 0.5, %v3230_v33  ;;  %v952_v44 = vmul.f32 %v888_v27, %v3611_v4  ;;  %v891_v46 = vadd.f32 0.5, %v827_v30 }
 0x115   :  { %v1043_v39 = vadd.f32 %v1042_v35, %v1041_v29  ;;  %3243 = vtanh.f32 %v707_v24  ;;  %v3670_v37 = vpop.f32.mrf.mxu0  ;;  %v3232_v42 = vpop.eup %3231  ;;  %v1049_v12 = vsel %vm31_vm3, %v954_v58, 0.0 }
 0x116   :  { %3245 = vtanh.f32 %v705_v38  ;;  %v710_v5 = vmul.f32 0.5, %v3670_v37  ;;  %v889_v49 = vadd.f32 0.5, %v825_v59  ;;  %v830_v10 = vmul.f32 0.5, %v3232_v42 }
 0x117   :  { %v1045_v45 = vadd.f32 %v1044_v43, %v1043_v39  ;;  %v3675_v52 = vpop.f32.mrf.mxu0  ;;  %v3234_v55 = vpop.eup %3233  ;;  %v1046_v63 = vsel %vm31_vm3, %v952_v44, 0.0  ;;  %v955_v57 = vmul.f32 %v3617_v13, %v891_v46 }
 0x118   :  { %3247 = vtanh.f32 %v710_v5  ;;  %v708_v60 = vmul.f32 0.5, %v3675_v52  ;;  %v953_v3 = vmul.f32 %v889_v49, %v3622_v11  ;;  %v828_v0 = vmul.f32 0.5, %v3234_v55 }
 0x119   :  { %v1123_v40 = vadd.f32 %v1045_v45, %v994_v54  ;;  %v3680_v4 = vpop.f32.mrf.mxu0  ;;  %v894_v14 = vadd.f32 0.5, %v830_v10  ;;  %v1051_v21 = vsel %vm31_vm3, %v955_v57, 0.0 }
 0x11a   :  { %v3236_v61 = vpop.eup %3235  ;;  %3249 = vtanh.f32 %v708_v60  ;;  %v711_v1 = vmul.f32 0.5, %v3680_v4  ;;  %v1047_v6 = vsel %vm31_vm3, %v953_v3, 0.0  ;;  %v892_v7 = vadd.f32 0.5, %v828_v0 }
 0x11b   :  { %v3238_v2 = vpop.eup %3237  ;;  %1131 = vst.msk [vmem:[#allocation2 + $0x10] sm:$0xff] %vm31_vm3, %v1123_v40  ;;  %v831_v47 = vmul.f32 0.5, %v3236_v61  ;;  %v3687_v11 = vpop.f32.mrf.mxu0  ;;  %v1048_v9 = vadd.f32 %v1047_v6, %v1046_v63  ;;  %v958_v29 = vmul.f32 %v3627_v31, %v894_v14  ;;  %v995_v61 = vld [vmem:[#allocation2 + $0x18] sm:$0xff] }
 0x11c   :  { %v829_v16 = vmul.f32 0.5, %v3238_v2  ;;  %3251 = vtanh.f32 %v711_v1  ;;  %v709_v53 = vmul.f32 0.5, %v3687_v11  ;;  %v956_v15 = vmul.f32 %v892_v7, %v3631_v41 }
 0x11d   :  { %v3692_v17 = vpop.f32.mrf.mxu0  ;;  %v3240_v19 = vpop.eup %3239  ;;  %v1050_v13 = vadd.f32 %v1049_v12, %v1048_v9  ;;  %v895_v22 = vadd.f32 0.5, %v831_v47  ;;  %v1057_v49 = vsel %vm31_vm3, %v958_v29, 0.0 }
 0x11e   :  { %v893_v28 = vadd.f32 0.5, %v829_v16  ;;  %3253 = vtanh.f32 %v709_v53  ;;  %v714_v20 = vmul.f32 0.5, %v3692_v17  ;;  %v834_v23 = vmul.f32 0.5, %v3240_v19 }
 0x11f   :  { %v3696_v25 = vpop.f32.mrf.mxu0  ;;  %v3242_v18 = vpop.eup %3241  ;;  %v1052_v26 = vadd.f32 %v1051_v21, %v1050_v13  ;;  %v1053_v30 = vsel %vm31_vm3, %v956_v15, 0.0 }
 0x120   :  { %v957_v27 = vmul.f32 %v893_v28, %v3645_v62  ;;  %3255 = vtanh.f32 %v714_v20  ;;  %v712_v41 = vmul.f32 0.5, %v3696_v25  ;;  %v832_v24 = vmul.f32 0.5, %v3242_v18  ;;  %v3087_v18 = vld [vmem:[%s4224_s4 + $0x178] sm:$0xff]  }
 0x121   :  { %v3702_v33 = vpop.f32.mrf.mxu0  ;;  %v1054_v36 = vadd.f32 %v1053_v30, %v1052_v26  ;;  %v959_v62 = vmul.f32 %v3638_v50, %v895_v22  ;;  %v898_v42 = vadd.f32 0.5, %v834_v23  ;;  %v3088_v30 = vld [vmem:[%s4224_s4 + $0x138] sm:$0xff]   ;;  %2856 = vmatprep.subr.bf16.mxu0 %v3087_v18 }
 0x122   :  { %v3244_v35 = vpop.eup %3243  ;;  %v1055_v38 = vsel %vm31_vm3, %v957_v27, 0.0  ;;  %3257 = vtanh.f32 %v712_v41  ;;  %v715_v39 = vmul.f32 0.5, %v3702_v33  ;;  %v896_v43 = vadd.f32 0.5, %v832_v24  ;;  %2857 = vmatpush3.bf16.msra.mxu0 %v3088_v30  ;;  %v3097_v30 = vld [vmem:[%s4224_s4 + $0x158] sm:$0xff]  }
 0x123   :  { %v3246_v59 = vpop.eup %3245  ;;  %v835_v54 = vmul.f32 0.5, %v3244_v35  ;;  %v3707_v44 = vpop.f32.mrf.mxu0  ;;  %v1056_v31 = vadd.f32 %v1055_v38, %v1054_v36  ;;  %v1059_v0 = vsel %vm31_vm3, %v959_v62, 0.0  ;;  %v962_v57 = vmul.f32 %v3651_v8, %v898_v42  ;;  %v1140_v38 = vld [vmem:[#allocation2] sm:$0xff] }
 0x124   :  { %v833_v5 = vmul.f32 0.5, %v3246_v59  ;;  %3259 = vtanh.f32 %v715_v39  ;;  %v713_v45 = vmul.f32 0.5, %v3707_v44  ;;  %v960_v55 = vmul.f32 %v896_v43, %v3656_v51 }
 0x125   :  { %v3248_v46 = vpop.eup %3247  ;;  %v899_v58 = vadd.f32 0.5, %v835_v54  ;;  %v3712_v60 = vpop.f32.mrf.mxu0  ;;  %v1058_v40 = vadd.f32 %v1057_v49, %v1056_v31  ;;  %v3090_v54 = vld [vmem:[%s4224_s4 + $0x130] sm:$0xff]  }
 0x126   :  { %v897_v50 = vadd.f32 0.5, %v833_v5  ;;  %v838_v3 = vmul.f32 0.5, %v3248_v46  ;;  %3261 = vtanh.f32 %v713_v45  ;;  %v718_v63 = vmul.f32 0.5, %v3712_v60 }
 0x127   :  { %v3250_v10 = vpop.eup %3249  ;;  %v3716_v1 = vpop.f32.mrf.mxu0  ;;  %v1060_v2 = vadd.f32 %v1059_v0, %v1058_v40  ;;  %v1061_v47 = vsel %vm31_vm3, %v960_v55, 0.0  ;;  %v963_v9 = vmul.f32 %v3661_v32, %v899_v58  ;;  %v1064_v32 = vsel %vm31_vm3, %v962_v57, 0.0 }
 0x128   :  { %v961_v51 = vmul.f32 %v897_v50, %v3666_v56  ;;  %v836_v6 = vmul.f32 0.5, %v3250_v10  ;;  %3263 = vtanh.f32 %v718_v63  ;;  %v716_v16 = vmul.f32 0.5, %v3716_v1 }
 0x129   :  { %v3252_v7 = vpop.eup %3251  ;;  %v3723_v53 = vpop.f32.mrf.mxu0  ;;  %v1124_v12 = vadd.f32 %v1060_v2, %v995_v61  ;;  %v902_v15 = vadd.f32 0.5, %v838_v3  ;;  %v1066_v24 = vsel %vm31_vm3, %v963_v9, 0.0  ;;  %v1148_v50 = vsel %vm31_vm3, %v1140_v38, 0.0  ;;  %v3093_v9 = vld [vmem:[%s4224_s4 + $0x160] sm:$0xff]  }
 0x12a   :  { %v1062_v14 = vsel %vm31_vm3, %v961_v51, 0.0  ;;  %v900_v19 = vadd.f32 0.5, %v836_v6  ;;  %v839_v28 = vmul.f32 0.5, %v3252_v7  ;;  %3265 = vtanh.f32 %v716_v16  ;;  %v996_v51 = vld [vmem:[#allocation2 + $0x20] sm:$0xff] }
 0x12b   :  { %v3254_v13 = vpop.eup %3253  ;;  %v1063_v8 = vadd.f32 %v1062_v14, %v1061_v47  ;;  %v719_v56 = vmul.f32 0.5, %v3723_v53  ;;  %v3727_v20 = vpop.f32.mrf.mxu0  ;;  %1132 = vst.msk [vmem:[#allocation2 + $0x18] sm:$0xff] %vm31_vm3, %v1124_v12  ;;  %v966_v59 = vmul.f32 %v3670_v37, %v902_v15  ;;  %v3091_v37 = vld [vmem:[%s4224_s4 + $0x168] sm:$0xff]  }
 0x12c   :  { %v964_v21 = vmul.f32 %v900_v19, %v3675_v52  ;;  %v837_v22 = vmul.f32 0.5, %v3254_v13  ;;  %v717_v23 = vmul.f32 0.5, %v3727_v20  ;;  %v903_v41 = vadd.f32 0.5, %v839_v28  ;;  %v3089_v52 = vld [vmem:[%s4224_s4 + $0x170] sm:$0xff]  }
 0x12d   :  { %v3256_v26 = vpop.eup %3255  ;;  %v1065_v27 = vadd.f32 %v1064_v32, %v1063_v8  ;;  %3267 = vtanh.f32 %v719_v56  ;;  %v3736_v29 = vpop.f32.mrf.mxu0  ;;  %2858 = vmatprep.subr.bf16.mxu0 %v3089_v52  ;;  %v1072_v57 = vsel %vm31_vm3, %v966_v59, 0.0  ;;  %v3098_v59 = vld [vmem:[%s4224_s4 + $0x118] sm:$0xff]  }
 0x12e   :  { %v1068_v35 = vsel %vm31_vm3, %v964_v21, 0.0  ;;  %v901_v36 = vadd.f32 0.5, %v837_v22  ;;  %3269 = vtanh.f32 %v717_v23  ;;  %v722_v42 = vmul.f32 0.5, %v3736_v29  ;;  %2859 = vmatpush3.bf16.msra.mxu0 %v3090_v54  ;;  %v3094_v22 = vld [vmem:[%s4224_s4 + $0x120] sm:$0xff]  }
 0x12f   :  { %v3258_v39 = vpop.eup %3257  ;;  %v1067_v62 = vadd.f32 %v1066_v24, %v1065_v27  ;;  %v3748_v43 = vpop.f32.mrf.mxu0  ;;  %v842_v5 = vmul.f32 0.5, %v3256_v26  ;;  %v967_v58 = vmul.f32 %v3680_v4, %v903_v41  ;;  %v3092_v4 = vld [vmem:[%s4224_s4 + $0x128] sm:$0xff]   ;;  %2860 = vmatprep.subr.bf16.mxu0 %v3091_v37 }
 0x130   :  { %v965_v31 = vmul.f32 %v901_v36, %v3687_v11  ;;  %v840_v45 = vmul.f32 0.5, %v3258_v39  ;;  %v720_v46 = vmul.f32 0.5, %v3748_v43  ;;  %3271 = vtanh.f32 %v722_v42 }
 0x131   :  { %v3260_v49 = vpop.eup %3259  ;;  %v1069_v55 = vadd.f32 %v1068_v35, %v1067_v62  ;;  %v3759_v40 = vpop.f32.mrf.mxu0  ;;  %v906_v6 = vadd.f32 0.5, %v842_v5  ;;  %v1074_v13 = vsel %vm31_vm3, %v967_v58, 0.0 }
 0x132   :  { %v1070_v3 = vsel %vm31_vm3, %v965_v31, 0.0  ;;  %v904_v11 = vadd.f32 0.5, %v840_v45  ;;  %v843_v10 = vmul.f32 0.5, %v3260_v49  ;;  %3273 = vtanh.f32 %v720_v46  ;;  %2861 = vmatpush3.bf16.msra.mxu0 %v3092_v4  ;;  %v1141_v49 = vld [vmem:[#allocation2 + $0x8] sm:$0xff] }
 0x133   :  { %v3262_v0 = vpop.eup %3261  ;;  %v1071_v61 = vadd.f32 %v1070_v3, %v1069_v55  ;;  %v723_v63 = vmul.f32 0.5, %v3759_v40  ;;  %v3764_v2 = vpop.f32.mrf.mxu0  ;;  %v970_v18 = vmul.f32 %v3692_v17, %v906_v6  ;;  %2862 = vmatprep.subr.bf16.mxu0 %v3093_v9  ;;  %v1155_v6 = vsel %vm31_vm3, %v1141_v49, 0.0 }
 0x134   :  { %v968_v7 = vmul.f32 %v904_v11, %v3696_v25  ;;  %v841_v47 = vmul.f32 0.5, %v3262_v0  ;;  %v907_v12 = vadd.f32 0.5, %v843_v10  ;;  %v721_v14 = vmul.f32 0.5, %v3764_v2 }
 0x135   :  { %v1073_v16 = vadd.f32 %v1072_v57, %v1071_v61  ;;  %3275 = vtanh.f32 %v723_v63  ;;  %v3775_v15 = vpop.f32.mrf.mxu0  ;;  %v3264_v19 = vpop.eup %3263  ;;  %v1149_v25 = vrot.slane %v1148_v50, 4  ;;  %v1079_v45 = vsel %vm31_vm3, %v970_v18, 0.0 }
 0x136   :  { %v905_v8 = vadd.f32 0.5, %v841_v47  ;;  %v726_v28 = vmul.f32 0.5, %v3775_v15  ;;  %v846_v32 = vmul.f32 0.5, %v3264_v19  ;;  %3277 = vtanh.f32 %v721_v14  ;;  %2863 = vmatpush3.bf16.msra.mxu0 %v3094_v22 }
 0x137   :  { %v1075_v56 = vadd.f32 %v1074_v13, %v1073_v16  ;;  %v3779_v21 = vpop.f32.mrf.mxu0  ;;  %v3266_v23 = vpop.eup %3265  ;;  %v1076_v26 = vsel %vm31_vm3, %v968_v7, 0.0  ;;  %v971_v24 = vmul.f32 %v3702_v33, %v907_v12  ;;  %v1150_v5 = vadd.f32 %v1149_v25, %v1148_v50  ;;  %2864 = vmatprep.subr.bf16.mxu0 %v3097_v30  ;;  %v1142_v25 = vld [vmem:[#allocation2 + $0x10] sm:$0xff] }
 0x138   :  { %v969_v27 = vmul.f32 %v905_v8, %v3707_v44  ;;  %v724_v41 = vmul.f32 0.5, %v3779_v21  ;;  %v844_v35 = vmul.f32 0.5, %v3266_v23  ;;  %3279 = vtanh.f32 %v726_v28 }
 0x139   :  { %v1125_v52 = vadd.f32 %v1075_v56, %v996_v51  ;;  %v3792_v36 = vpop.f32.mrf.mxu0  ;;  %v910_v39 = vadd.f32 0.5, %v846_v32  ;;  %v1081_v55 = vsel %vm31_vm3, %v971_v24, 0.0  ;;  %v1151_v51 = vrot.slane %v1150_v5, 2 }
 0x13a   :  { %v3268_v38 = vpop.eup %3267  ;;  %v1077_v17 = vsel %vm31_vm3, %v969_v27, 0.0  ;;  %3281 = vtanh.f32 %v724_v41  ;;  %v727_v44 = vmul.f32 0.5, %v3792_v36  ;;  %v908_v33 = vadd.f32 0.5, %v844_v35  ;;  %2865 = vmatpush3.bf16.msra.mxu0 %v3098_v59  ;;  %v1143_v41 = vld [vmem:[#allocation2 + $0x18] sm:$0xff] }
 0x13b   :  { %v3270_v62 = vpop.eup %3269  ;;  %1133 = vst.msk [vmem:[#allocation2 + $0x20] sm:$0xff] %vm31_vm3, %v1125_v52  ;;  %v1078_v42 = vadd.f32 %v1077_v17, %v1076_v26  ;;  %v847_v54 = vmul.f32 0.5, %v3268_v38  ;;  %v3800_v31 = vpop.f32.mrf.mxu0  ;;  %v974_v63 = vmul.f32 %v3712_v60, %v910_v39  ;;  %v3824_v22 = vadd.f32 %v1151_v51, %v1150_v5  ;;  %v997_v17 = vld [vmem:[#allocation2 + $0x28] sm:$0xff] }
 0x13c   :  { %v845_v46 = vmul.f32 0.5, %v3270_v62  ;;  %3283 = vtanh.f32 %v727_v44  ;;  %v725_v37 = vmul.f32 0.5, %v3800_v31  ;;  %v972_v3 = vmul.f32 %v908_v33, %v3716_v1 }
 0x13d   :  { %v1080_v58 = vadd.f32 %v1079_v45, %v1078_v42  ;;  %v911_v11 = vadd.f32 0.5, %v847_v54  ;;  %v3806_v10 = vpop.f32.mrf.mxu0  ;;  %v3272_v61 = vpop.eup %3271  ;;  %v1087_v56 = vsel %vm31_vm3, %v974_v63, 0.0  ;;  %v1156_v23 = vrot.slane %v1155_v6, 4 }
 0x13e   :  { %v909_v0 = vadd.f32 0.5, %v845_v46  ;;  %3285 = vtanh.f32 %v725_v37  ;;  %v730_v50 = vmul.f32 0.5, %v3806_v10  ;;  %v1083_v1 = vsel %vm31_vm3, %v972_v3, 0.0 }
 0x13f   :  { %v1082_v4 = vadd.f32 %v1081_v55, %v1080_v58  ;;  %v3810_v57 = vpop.f32.mrf.mxu0  ;;  %v3274_v7 = vpop.eup %3273  ;;  %v975_v12 = vmul.f32 %v3723_v53, %v911_v11  ;;  %v850_v8 = vmul.f32 0.5, %v3272_v61  ;;  %v1162_v35 = vsel %vm31_vm3, %v1142_v25, 0.0 }
 0x140   :  { %v973_v47 = vmul.f32 %v909_v0, %v3727_v20  ;;  %3287 = vtanh.f32 %v730_v50  ;;  %v728_v9 = vmul.f32 0.5, %v3810_v57  ;;  %v848_v14 = vmul.f32 0.5, %v3274_v7 }
 0x141   :  { %v1084_v16 = vadd.f32 %v1083_v1, %v1082_v4  ;;  %v3817_v60 = vpop.f32.mrf.mxu0  ;;  %v1089_v30 = vsel %vm31_vm3, %v975_v12, 0.0  ;;  %v914_v39 = vadd.f32 0.5, %v850_v8  ;;  %v1153_v54 = vrot.slane %v3824_v22, 1 }
 0x142   :  { %v3276_v19 = vpop.eup %3275  ;;  %v1085_v13 = vsel %vm31_vm3, %v973_v47, 0.0  ;;  %3289 = vtanh.f32 %v728_v9  ;;  %v731_v28 = vmul.f32 0.5, %v3817_v60  ;;  %v912_v18 = vadd.f32 0.5, %v848_v14  ;;  %v1144_v12 = vld [vmem:[#allocation2 + $0x20] sm:$0xff] }
 0x143   :  { %v1086_v20 = vadd.f32 %v1085_v13, %v1084_v16  ;;  %v3822_v32 = vpop.f32.mrf.mxu0  ;;  %v3278_v53 = vpop.eup %3277  ;;  %v851_v26 = vmul.f32 0.5, %v3276_v19  ;;  %v3835_v5 = vadd.f32 %v1156_v23, %v1155_v6  ;;  %v1169_v45 = vsel %vm31_vm3, %v1143_v41, 0.0 }
 0x144   :  { %3291 = vtanh.f32 %v731_v28  ;;  %v729_v27 = vmul.f32 0.5, %v3822_v32  ;;  %v849_v44 = vmul.f32 0.5, %v3278_v53  ;;  %v976_v46 = vmul.f32 %v912_v18, %v3748_v43 }
 0x145   :  { %v1088_v52 = vadd.f32 %v1087_v56, %v1086_v20  ;;  %v3828_v24 = vpop.f32.mrf.mxu0  ;;  %v3280_v38 = vpop.eup %3279  ;;  %v915_v37 = vadd.f32 0.5, %v851_v26  ;;  %v1163_v50 = vrot.slane %v1162_v35, 4  ;;  %v978_v61 = vmul.f32 %v3736_v29, %v914_v39 }
 0x146   :  { %3293 = vtanh.f32 %v729_v27  ;;  %v734_v59 = vmul.f32 0.5, %v3828_v24  ;;  %v913_v49 = vadd.f32 0.5, %v849_v44  ;;  %v854_v4 = vmul.f32 0.5, %v3280_v38 }
 0x147   :  { %v3282_v62 = vpop.eup %3281  ;;  %v1090_v42 = vadd.f32 %v1089_v30, %v1088_v52  ;;  %v3832_v33 = vpop.f32.mrf.mxu0  ;;  %v1158_v1 = vrot.slane %v3835_v5, 2  ;;  %v1170_v47 = vrot.slane %v1169_v45, 4  ;;  %v1091_v9 = vsel %vm31_vm3, %v976_v46, 0.0 }
 0x148   :  { %v852_v55 = vmul.f32 0.5, %v3282_v62  ;;  %3295 = vtanh.f32 %v734_v59  ;;  %v732_v11 = vmul.f32 0.5, %v3832_v33  ;;  %v977_v63 = vmul.f32 %v913_v49, %v3764_v2 }
 0x149   :  { %v3284_v58 = vpop.eup %3283  ;;  %v1126_v3 = vadd.f32 %v1090_v42, %v997_v17  ;;  %v3840_v0 = vpop.f32.mrf.mxu0  ;;  %v979_v16 = vmul.f32 %v3759_v40, %v915_v37  ;;  %v1094_v28 = vsel %vm31_vm3, %v978_v61, 0.0  ;;  %v918_v25 = vadd.f32 0.5, %v854_v4 }
 0x14a   :  { %v916_v51 = vadd.f32 0.5, %v852_v55  ;;  %3297 = vtanh.f32 %v732_v11  ;;  %v735_v43 = vmul.f32 0.5, %v3840_v0  ;;  %v1092_v29 = vsel %vm31_vm3, %v977_v63, 0.0  ;;  %v998_v63 = vld [vmem:[#allocation2 + $0x30] sm:$0xff] }
 0x14b   :  { %v3286_v6 = vpop.eup %3285  ;;  %1134 = vst.msk [vmem:[#allocation2 + $0x28] sm:$0xff] %vm31_vm3, %v1126_v3  ;;  %v3846_v7 = vpop.f32.mrf.mxu0  ;;  %v855_v2 = vmul.f32 0.5, %v3284_v58  ;;  %v1093_v19 = vadd.f32 %v1092_v29, %v1091_v9  ;;  %v3855_v20 = vadd.f32 %v1163_v50, %v1162_v35  ;;  %v1176_v18 = vsel %vm31_vm3, %v1144_v12, 0.0 }
 0x14c   :  { %v853_v13 = vmul.f32 0.5, %v3286_v6  ;;  %3299 = vtanh.f32 %v735_v43  ;;  %v733_v8 = vmul.f32 0.5, %v3846_v7  ;;  %v980_v56 = vmul.f32 %v916_v51, %v3779_v21 }
 0x14d   :  { %v3288_v14 = vpop.eup %3287  ;;  %v1095_v53 = vadd.f32 %v1094_v28, %v1093_v19  ;;  %v1096_v26 = vsel %vm31_vm3, %v979_v16, 0.0  ;;  %v919_v27 = vadd.f32 0.5, %v855_v2  ;;  %v1171_v39 = vadd.f32 %v1170_v47, %v1169_v45 }
 0x14e   :  { %v917_v40 = vadd.f32 0.5, %v853_v13  ;;  %3301 = vtanh.f32 %v733_v8  ;;  %v858_v41 = vmul.f32 0.5, %v3288_v14  ;;  %v982_v21 = vmul.f32 %v3775_v15, %v918_v25 }
 0x14f   :  { %v3290_v23 = vpop.eup %3289  ;;  %v1097_v38 = vadd.f32 %v1096_v26, %v1095_v53  ;;  %v1098_v35 = vsel %vm31_vm3, %v980_v56, 0.0  ;;  %v1177_v49 = vrot.slane %v1176_v18, 4  ;;  %v983_v55 = vmul.f32 %v3792_v36, %v919_v27 }
 0x150   :  { %v856_v30 = vmul.f32 0.5, %v3290_v23  ;;  %v981_v17 = vmul.f32 %v917_v40, %v3800_v31  ;;  %v922_v58 = vadd.f32 0.5, %v858_v41  ;;  %v1165_v11 = vrot.slane %v3855_v20, 2 }
 0x151   :  { %v3292_v52 = vpop.eup %3291  ;;  %v1099_v46 = vadd.f32 %v1098_v35, %v1097_v38  ;;  %v1172_v45 = vrot.slane %v1171_v39, 2  ;;  %v1102_v61 = vsel %vm31_vm3, %v982_v21, 0.0  ;;  %v1178_v47 = vadd.f32 %v1177_v49, %v1176_v18 }
 0x152   :  { %v920_v44 = vadd.f32 0.5, %v856_v30  ;;  %v859_v59 = vmul.f32 0.5, %v3292_v52  ;;  %v1145_v62 = vld [vmem:[#allocation2 + $0x28] sm:$0xff]  ;;  %v1100_v37 = vsel %vm31_vm3, %v981_v17, 0.0  ;;  %v1104_v36 = vsel %vm31_vm3, %v983_v55, 0.0 }
 0x153   :  { %v3294_v42 = vpop.eup %3293  ;;  %v1101_v31 = vadd.f32 %v1100_v37, %v1099_v46  ;;  %v1183_v15 = vsel %vm31_vm3, %v1145_v62, 0.0  ;;  %v986_v16 = vmul.f32 %v3806_v10, %v922_v58  ;;  %v1179_v18 = vrot.slane %v1178_v47, 2 }
 0x154   :  { %v857_v3 = vmul.f32 0.5, %v3294_v42  ;;  %v984_v4 = vmul.f32 %v920_v44, %v3810_v57  ;;  %v923_v51 = vadd.f32 0.5, %v859_v59  ;;  %v1184_v2 = vrot.slane %v1183_v15, 4 }
 0x155   :  { %v3296_v50 = vpop.eup %3295  ;;  %v1103_v43 = vadd.f32 %v1102_v61, %v1101_v31  ;;  %v1109_v10 = vsel %vm31_vm3, %v986_v16, 0.0  ;;  %v1166_v38 = vadd.f32 %v1165_v11, %v3855_v20  ;;  %v1173_v59 = vadd.f32 %v1172_v45, %v1171_v39  ;;  %v999_v39 = vld [vmem:[#allocation2 + $0x38] sm:$0xff] }
 0x156   :  { %v921_v6 = vadd.f32 0.5, %v857_v3  ;;  %v862_v14 = vmul.f32 0.5, %v3296_v50  ;;  %v1106_v8 = vsel %vm31_vm3, %v984_v4, 0.0  ;;  %v987_v57 = vmul.f32 %v3817_v60, %v923_v51 }
 0x157   :  { %v3298_v9 = vpop.eup %3297  ;;  %v1105_v12 = vadd.f32 %v1104_v36, %v1103_v43  ;;  %v1185_v17 = vadd.f32 %v1184_v2, %v1183_v15  ;;  %v1167_v37 = vrot.slane %v1166_v38, 1  ;;  %v1174_v20 = vrot.slane %v1173_v59, 1 }
 0x158   :  { %v985_v29 = vmul.f32 %v921_v6, %v3822_v32  ;;  %v860_v19 = vmul.f32 0.5, %v3298_v9  ;;  %v1159_v32 = vadd.f32 %v1158_v1, %v3835_v5  ;;  %v926_v27 = vadd.f32 0.5, %v862_v14 }
 0x159   :  { %v3300_v13 = vpop.eup %3299  ;;  %v1127_v25 = vadd.f32 %v1105_v12, %v998_v63  ;;  %v1111_v30 = vsel %vm31_vm3, %v987_v57, 0.0  ;;  %v1180_v5 = vadd.f32 %v1179_v18, %v1178_v47  ;;  %v1186_v49 = vrot.slane %v1185_v17, 2 }
 0x15a   :  { %v1107_v28 = vsel %vm31_vm3, %v985_v29, 0.0  ;;  %v924_v23 = vadd.f32 0.5, %v860_v19  ;;  %v863_v53 = vmul.f32 0.5, %v3300_v13  ;;  %v990_v1 = vmul.f32 %v3828_v24, %v926_v27 }
 0x15b   :  { %v1108_v56 = vadd.f32 %v1107_v28, %v1106_v8  ;;  %v3302_v40 = vpop.eup %3301  ;;  %1135 = vst.msk [vmem:[#allocation2 + $0x30] sm:$0xff] %vm31_vm3, %v1127_v25  ;;  %v1160_v46 = vrot.slane %v1159_v32, 1  ;;  %v1181_v11 = vrot.slane %v1180_v5, 1  ;;  %v1154_v4 = vadd.f32 %v1153_v54, %v3824_v22 }
 0x15c   :  { %v988_v60 = vmul.f32 %v924_v23, %v3832_v33  ;;  %v861_v41 = vmul.f32 0.5, %v3302_v40  ;;  %v927_v52 = vadd.f32 0.5, %v863_v53  ;;  %v1117_v31 = vsel %vm31_vm3, %v990_v1, 0.0 }
 0x15d   :  { %v1110_v26 = vadd.f32 %v1109_v10, %v1108_v56  ;;  %v1161_v47 = vadd.f32 %v1160_v46, %v1159_v32  ;;  %v1168_v9 = vadd.f32 %v1167_v37, %v1166_v38  ;;  %v1204_v16 = vmul.f32 0.015625, %v1154_v4  ;;  %v3083_v4 = vld [vmem:[%s4223_s3 + $0x74] ss:$40 sps:$4 sm:$0xff]  }
 0x15e   :  { %v1113_v35 = vsel %vm31_vm3, %v988_v60, 0.0  ;;  %v925_v44 = vadd.f32 0.5, %v861_v41  ;;  %v991_v33 = vmul.f32 %v3840_v0, %v927_v52  ;;  %v1175_v29 = vadd.f32 %v1174_v20, %v1173_v59 }
 0x15f   :  { %v1112_v21 = vadd.f32 %v1111_v30, %v1110_v26  ;;  %v1182_v2 = vadd.f32 %v1181_v11, %v1180_v5  ;;  %v1205_v14 = vmul.f32 0.015625, %v1161_v47  ;;  %v1206_v19 = vmul.f32 0.015625, %v1168_v9  ;;  %v3095_v47 = vld [vmem:[%s4224_s4 + $0x78] sm:$0xff]  }
 0x160   :  { %v989_v42 = vmul.f32 %v925_v44, %v3846_v7  ;;  %v1119_v24 = vsel %vm31_vm3, %v991_v33, 0.0  ;;  %v1187_v7 = vadd.f32 %v1186_v49, %v1185_v17  ;;  %v1207_v8 = vmul.f32 0.015625, %v1175_v29  ;;  %v3096_v9 = vld [vmem:[%s4224_s4 + $0x38] sm:$0xff]   ;;  %v3102_v29 = vld [vmem:[%s4224_s4 + $0x28] sm:$0xff]  }
 0x161   :  { %v1114_v62 = vadd.f32 %v1113_v35, %v1112_v21  ;;  %v1208_v28 = vmul.f32 0.015625, %v1182_v2  ;;  %v1213_v40 = vpack.c.bf16 %v1205_v14, %v1205_v14  ;;  %v1214_v10 = vpack.c.bf16 %v1206_v19, %v1206_v19  ;;  %v3103_v2 = vld [vmem:[%s4224_s4 + $0x60] sm:$0xff]   ;;  %v3105_v14 = vld [vmem:[%s4224_s4 + $0x58] sm:$0xff]  }
 0x162   :  { %v1115_v55 = vsel %vm31_vm3, %v989_v42, 0.0  ;;  %v1146_v3 = vld [vmem:[#allocation2 + $0x30] sm:$0xff]  ;;  %v1188_v51 = vrot.slane %v1187_v7, 1  ;;  %v1212_v18 = vpack.c.bf16 %v1204_v16, %v1204_v16  ;;  %v1215_v26 = vpack.c.bf16 %v1207_v8, %v1207_v8  ;;  %v3101_v16 = vld [vmem:[%s4224_s4 + $0x68] sm:$0xff]   ;;  %v3106_v19 = vld [vmem:[%s4224_s4 + $0x18] sm:$0xff]  }
 0x163   :  { %v1116_v58 = vadd.f32 %v1115_v55, %v1114_v62  ;;  %v1190_v45 = vsel %vm31_vm3, %v1146_v3, 0.0  ;;  %v1216_v27 = vpack.c.bf16 %v1208_v28, %v1208_v28  ;;  %v1249_v30 = vunpack.c.l.b16 %v1213_v40  ;;  %v3063_v3 = vld [vmem:[%s4223_s3 + $0x58] ss:$40 sps:$4 sm:$0xff]   ;;  %v3108_v8 = vld [vmem:[%s4224_s4 + $0x110] sm:$0xff]   ;;  %v3118_v40 = vld [vmem:[%s4224_s4 + $0x108] sm:$0xff]  }
 0x164   :  { %v1191_v50 = vrot.slane %v1190_v45, 4  ;;  %v1189_v12 = vadd.f32 %v1188_v51, %v1187_v7  ;;  %v1250_v38 = vunpack.c.l.b16 %v1214_v10  ;;  %v1248_v21 = vunpack.c.l.b16 %v1212_v18  ;;  %v3072_v7 = vld [vmem:[%s4223_s3 + $0x10] ss:$40 sps:$4 sm:$0xff]   ;;  %v3124_v10 = vld [vmem:[%s4224_s4 + $0x140] sm:$0xff]  }
 0x165   :  { %v1118_v15 = vadd.f32 %v1117_v31, %v1116_v58  ;;  %v1251_v35 = vunpack.c.l.b16 %v1215_v26  ;;  %v1252_v44 = vunpack.c.l.b16 %v1216_v27  ;;  %v3068_v31 = vld [vmem:[%s4223_s3 + $0xc] ss:$40 sps:$4 sm:$0xff]   ;;  %v3081_v51 = vld [vmem:[%s4223_s3 + $0x70] ss:$40 sps:$4 sm:$0xff]  }
 0x166   :  { %v1192_v0 = vadd.f32 %v1191_v50, %v1190_v45  ;;  %v1209_v25 = vmul.f32 0.015625, %v1189_v12  ;;  %v1257_v1 = vsel %vm1256_vm4, %v1249_v30, %v1248_v21  ;;  %v3071_v45 = vld [vmem:[%s4223_s3 + $0x64] ss:$40 sps:$4 sm:$0xff]   ;;  %v3110_v28 = vld [vmem:[%s4224_s4 + $0x10] sm:$0xff]   ;;  %v3128_v18 = vld [vmem:[%s4224_s4 + $0x278] sm:$0xff]  }
 0x167   :  { %v1120_v61 = vadd.f32 %v1119_v24, %v1118_v15  ;;  %v1259_v42 = vsel %vm1258_vm5, %v1250_v38, %v1257_v1  ;;  %v3069_v24 = vld [vmem:[%s4223_s3 + $0x60] ss:$40 sps:$4 sm:$0xff]   ;;  %v3074_v15 = vld [vmem:[%s4223_s3 + $0x14] ss:$40 sps:$4 sm:$0xff]  }
 0x168   :  { %v1193_v6 = vrot.slane %v1192_v0, 2  ;;  %v1217_v41 = vpack.c.bf16 %v1209_v25, %v1209_v25  ;;  %v1261_v33 = vsel %vm1260_vm6, %v1251_v35, %v1259_v42  ;;  %v3077_v50 = vld [vmem:[%s4223_s3 + $0x6c] ss:$40 sps:$4 sm:$0xff]   ;;  %v3104_v12 = vld [vmem:[%s4224_s4 + $0x20] sm:$0xff]  }
 0x169   :  { %v1128_v63 = vadd.f32 %v1120_v61, %v999_v39  ;;  %v1263_v37 = vsel %vm1262_vm7, %v1252_v44, %v1261_v33  ;;  %v3066_v39 = vld [vmem:[%s4223_s3 + $0x8] ss:$40 sps:$4 sm:$0xff]   ;;  %v3113_v25 = vld [vmem:[%s4224_s4 + $0x40] sm:$0xff]  }
 0x16a   :  { %v1194_v43 = vadd.f32 %v1193_v6, %v1192_v0  ;;  %v1253_v5 = vunpack.c.l.b16 %v1217_v41  ;;  %v3075_v61 = vld [vmem:[%s4223_s3 + $0x68] ss:$40 sps:$4 sm:$0xff]   ;;  %v3080_v0 = vld [vmem:[%s4223_s3 + $0x1c] ss:$40 sps:$4 sm:$0xff]  }
 0x16b   :  { %1136 = vst.msk [vmem:[#allocation2 + $0x38] sm:$0xff] %vm31_vm3, %v1128_v63  ;;  %v3078_v63 = vld [vmem:[%s4223_s3 + $0x18] ss:$40 sps:$4 sm:$0xff]   ;;  %v3086_v6 = vld [vmem:[%s4223_s3 + $0x24] ss:$40 sps:$4 sm:$0xff]  }
 0x16c   :  { %v1195_v36 = vrot.slane %v1194_v43, 1  ;;  %v1265_v55 = vsel %vm1264_vm8, %v1253_v5, %v1263_v37 }
 0x16e   :  { %v1196_v22 = vadd.f32 %v1195_v36, %v1194_v43  ;;  %v3084_v43 = vld [vmem:[%s4223_s3 + $0x20] ss:$40 sps:$4 sm:$0xff]   ;;  %v3099_v36 = vld [vmem:[%s4224_s4 + $0x70] sm:$0xff]  }
 0x170   :  { %v1210_v53 = vmul.f32 0.015625, %v1196_v22  ;;  %v3111_v22 = vld [vmem:[%s4224_s4 + $0x48] sm:$0xff]  }
 0x172   :  { %v1147_v13 = vld [vmem:[#allocation2 + $0x38] sm:$0xff]  ;;  %v1218_v52 = vpack.c.bf16 %v1210_v53, %v1210_v53  ;;  %v3117_v53 = vld [vmem:[%s4224_s4 + $0x148] sm:$0xff]  }
 0x173   :  { %v1197_v57 = vsel %vm31_vm3, %v1147_v13, 0.0  ;;  %v3107_v13 = vld [vmem:[%s4224_s4 + $0x150] sm:$0xff]  }
 0x174   :  { %v1198_v54 = vrot.slane %v1197_v57, 4  ;;  %v1254_v62 = vunpack.c.l.b16 %v1218_v52  ;;  %2866 = vmatprep.subr.bf16.mxu0 %v3107_v13 }
 0x175   :  { %2867 = vmatpush3.bf16.msra.mxu0 %v3108_v8 }
 0x176   :  { %v1199_v56 = vadd.f32 %v1198_v54, %v1197_v57  ;;  %v1267_v20 = vsel %vm1266_vm9, %v1254_v62, %v1265_v55  ;;  %v3109_v57 = vld [vmem:[%s4224_s4 + $0x50] sm:$0xff]   ;;  %v3112_v54 = vld [vmem:[%s4224_s4 + $0x8] sm:$0xff]   ;;  %2868 = vmatprep.subr.bf16.mxu0 %v3117_v53 }
 0x178   :  { %v1200_v23 = vrot.slane %v1199_v56, 2 }
 0x179   :  { %2869 = vmatpush3.bf16.msra.mxu0 %v3118_v40 }
 0x17a   :  { %v1201_v32 = vadd.f32 %v1200_v23, %v1199_v56  ;;  %v3114_v56 = vld [vmem:[%s4224_s4] sm:$0xff]   ;;  %v3115_v23 = vld [vmem:[%s4224_s4 + $0xf8] sm:$0xff]   ;;  %2870 = vmatprep.subr.bf16.mxu0 %v3124_v10 }
 0x17b   :  { %v3129_v10 = vld [vmem:[%s4224_s4 + $0x98] sm:$0xff]  }
 0x17c   :  { %v1202_v60 = vrot.slane %v1201_v32, 1 }
 0x17e   :  { %v1203_v17 = vadd.f32 %v1202_v60, %v1201_v32  ;;  %v3126_v32 = vld [vmem:[%s4224_s4 + $0x100] sm:$0xff]  }
 0x17f   :  { %2871 = vmatpush3.bf16.msra.mxu0 %v3126_v32  ;;  %v3130_v32 = vld [vmem:[%s4224_s4 + $0x238] sm:$0xff]  }
 0x180   :  { %v1211_v59 = vmul.f32 0.015625, %v1203_v17  ;;  %2900 = vmatprep.subr.bf16.mxu0 %v3128_v18 }
 0x182   :  { %v1219_v46 = vpack.c.bf16 %v1211_v59, %v1211_v59 }
 0x184   :  { %v1255_v49 = vunpack.c.l.b16 %v1219_v46 }
 0x186   :  { %v1269_v58 = vsel %vm1268_vm10, %v1255_v49, %v1267_v20 }
 0x187   :  { %v1270_v11 = vpack.c.b16 %v1269_v58, %v1269_v58 }
 0x189   :  { %2684 = vmatmul.mubr.msk.bf16.vlgmr.msra.gmra.mxu1 %vm31_vm3, %v1270_v11 }
 0x18a   :  { %1428 = vmatpush1.bf16.msra.mxu1 %v3063_v3  ;;  %1447 = vmatprep.mubr.bf16.mxu1 %v3325_v48 }
 0x18b   :  { %1429 = vmatprep.subr.bf16.mxu1 %v3068_v31 }
 0x18e   :  { %1430 = vmatpush1.bf16.msra.mxu1 %v3066_v39 }
 0x18f   :  { %1468 = vmatprep.subr.bf16.mxu1 %v3071_v45  ;;  %v3116_v45 = vld [vmem:[%s4224_s4 + $0xb8] sm:$0xff]  }
 0x191   :  { %2685 = vmatmul.mubr.msk.bf16.vlgmr.msra.gmra.mxu1 %vm31_vm3, %v1270_v11 }
 0x192   :  { %1469 = vmatpush1.bf16.msra.mxu1 %v3069_v24  ;;  %1488 = vmatprep.mubr.bf16.mxu1 %v3325_v48 }
 0x193   :  { %1470 = vmatprep.subr.bf16.mxu1 %v3074_v15 }
 0x196   :  { %1471 = vmatpush1.bf16.msra.mxu1 %v3072_v7 }
 0x197   :  { %1509 = vmatprep.subr.bf16.mxu1 %v3077_v50 }
 0x199   :  { %2686 = vmatmul.mubr.msk.bf16.vlgmr.msra.gmra.mxu1 %vm31_vm3, %v1270_v11 }
 0x19a   :  { %1510 = vmatpush1.bf16.msra.mxu1 %v3075_v61  ;;  %1529 = vmatprep.mubr.bf16.mxu1 %v3325_v48  ;;  %v3119_v61 = vld [vmem:[%s4224_s4 + $0xf0] sm:$0xff]  }
 0x19b   :  { %1511 = vmatprep.subr.bf16.mxu1 %v3080_v0 }
 0x19e   :  { %1512 = vmatpush1.bf16.msra.mxu1 %v3078_v63 }
 0x19f   :  { %1550 = vmatprep.subr.bf16.mxu1 %v3083_v4 }
 0x1a1   :  { %2687 = vmatmul.mubr.msk.bf16.vlgmr.msra.gmra.mxu1 %vm31_vm3, %v1270_v11 }
 0x1a2   :  { %1551 = vmatpush1.bf16.msra.mxu1 %v3081_v51  ;;  %1570 = vmatprep.mubr.bf16.mxu1 %v3325_v48  ;;  %v3100_v48 = vld [vmem:[%s4224_s4 + $0x30] sm:$0xff]  }
 0x1a3   :  { %1552 = vmatprep.subr.bf16.mxu1 %v3086_v6  ;;  %v3120_v6 = vld [vmem:[%s4224_s4 + $0xb0] sm:$0xff]  }
 0x1a6   :  { %1553 = vmatpush1.bf16.msra.mxu1 %v3084_v43 }
 0x1a7   :  { %2812 = vmatprep.subr.bf16.mxu1 %v3095_v47  ;;  %v3121_v47 = vld [vmem:[%s4224_s4 + $0xe8] sm:$0xff]  }
 0x1a9   :  { %2688 = vmatmul.mubr.msk.bf16.vlgmr.msra.gmra.mxu1 %vm31_vm3, %v1270_v11 }
 0x1aa   :  { %2813 = vmatpush3.bf16.msra.mxu1 %v3096_v9 }
 0x1ab   :  { %2814 = vmatprep.subr.bf16.mxu1 %v3099_v36 }
 0x1ae   :  { %2815 = vmatpush3.bf16.msra.mxu1 %v3100_v48 }
 0x1af   :  { %2816 = vmatprep.subr.bf16.mxu1 %v3101_v16 }
 0x1b2   :  { %2817 = vmatpush3.bf16.msra.mxu1 %v3102_v29 }
 0x1b3   :  { %2818 = vmatprep.subr.bf16.mxu1 %v3103_v2  ;;  %v3122_v2 = vld [vmem:[%s4224_s4 + $0xa8] sm:$0xff]  }
 0x1b6   :  { %2819 = vmatpush3.bf16.msra.mxu1 %v3104_v12 }
 0x1b7   :  { %2820 = vmatprep.subr.bf16.mxu1 %v3105_v14 }
 0x1ba   :  { %2821 = vmatpush3.bf16.msra.mxu1 %v3106_v19  ;;  %v3123_v19 = vld [vmem:[%s4224_s4 + $0xe0] sm:$0xff]  }
 0x1bb   :  { %2822 = vmatprep.subr.bf16.mxu1 %v3109_v57 }
 0x1be   :  { %2823 = vmatpush3.bf16.msra.mxu1 %v3110_v28 }
 0x1bf   :  { %2824 = vmatprep.subr.bf16.mxu1 %v3111_v22 }
 0x1c2   :  { %2825 = vmatpush3.bf16.msra.mxu1 %v3112_v54  ;;  %v3125_v54 = vld [vmem:[%s4224_s4 + $0xa0] sm:$0xff]  }
 0x1c3   :  { %2826 = vmatprep.subr.bf16.mxu1 %v3113_v25 }
 0x1c6   :  { %2827 = vmatpush3.bf16.msra.mxu1 %v3114_v56 }
 0x1c7   :  { %2834 = vmatprep.subr.bf16.mxu1 %v3115_v23  ;;  %v3127_v23 = vld [vmem:[%s4224_s4 + $0xd8] sm:$0xff]  }
 0x249   :  { %v1408_v26 = vpop.f32.mrf.mxu1 }
 0x24a   :  { %v1579_v27 = vmul.f32 0.5, %v1408_v26 }
 0x24b   :  { %v1410_v60 = vpop.f32.mrf.mxu1 }
 0x24c   :  { %3303 = vtanh.f32 %v1579_v27  ;;  %v1580_v41 = vmul.f32 0.5, %v1410_v60  ;;  %v3132_v27 = vld [vmem:[%s4224_s4 + $0x270] sm:$0xff]  }
 0x24d   :  { %v1412_v30 = vpop.f32.mrf.mxu1 }
 0x24e   :  { %3305 = vtanh.f32 %v1580_v41 }
 0x24f   :  { %v1413_v52 = vpop.f32.mrf.mxu1 }
 0x250   :  { %v3133_v52 = vld [vmem:[%s4224_s4 + $0x90] sm:$0xff]  }
 0x251   :  { %v4021_v38 = vpop.f32.mrf.mxu1 }
 0x252   :  { %v1581_v7 = vmul.f32 0.5, %v4021_v38 }
 0x253   :  { %v1451_v17 = vpop.f32.mrf.mxu1 }
 0x254   :  { %v1582_v21 = vmul.f32 0.5, %v1451_v17 }
 0x255   :  { %v1453_v35 = vpop.f32.mrf.mxu1 }
 0x256   :  { %3307 = vtanh.f32 %v1582_v21  ;;  %v3135_v35 = vld [vmem:[%s4224_s4 + $0xc8] sm:$0xff]  }
 0x257   :  { %v1454_v44 = vpop.f32.mrf.mxu1 }
 0x258   :  { %v3136_v44 = vld [vmem:[%s4224_s4 + $0x268] sm:$0xff]  }
 0x259   :  { %v3304_v59 = vpop.eup %3303  ;;  %v1490_v5 = vpop.f32.mrf.mxu1 }
 0x25a   :  { %v1599_v1 = vmul.f32 0.5, %v3304_v59  ;;  %v1583_v62 = vmul.f32 0.5, %v1490_v5 }
 0x25b   :  { %v3306_v42 = vpop.eup %3305  ;;  %v1492_v46 = vpop.f32.mrf.mxu1 }
 0x25c   :  { %v1609_v33 = vadd.f32 0.5, %v1599_v1  ;;  %v1600_v37 = vmul.f32 0.5, %v3306_v42  ;;  %3309 = vtanh.f32 %v1583_v62  ;;  %v1584_v49 = vmul.f32 0.5, %v1492_v46  ;;  %v3138_v1 = vld [vmem:[%s4224_s4 + $0x228] sm:$0xff]  }
 0x25d   :  { %v1494_v55 = vpop.f32.mrf.mxu1 }
 0x25e   :  { %v1610_v20 = vadd.f32 0.5, %v1600_v37  ;;  %3311 = vtanh.f32 %v1584_v49  ;;  %v1619_v58 = vmul.f32 %v1609_v33, %v1408_v26  ;;  %v3131_v26 = vld [vmem:[%s4224_s4 + $0xd0] sm:$0xff]   ;;  %v3140_v33 = vld [vmem:[%s4224_s4 + $0x260] sm:$0xff]  }
 0x25f   :  { %v1495_v3 = vpop.f32.mrf.mxu1  ;;  %3313 = vtanh.f32 %v1581_v7 }
 0x260   :  { %v1620_v11 = vmul.f32 %v1610_v20, %v1410_v60  ;;  %v1629_v15 = vpack.c.bf16 %v1619_v58, %v1619_v58  ;;  %v3141_v20 = vld [vmem:[%s4224_s4 + $0x80] sm:$0xff]  }
 0x261   :  { %v4023_v31 = vpop.f32.mrf.mxu1  ;;  %v3142_v58 = vld [vmem:[%s4224_s4 + $0x220] sm:$0xff]  }
 0x262   :  { %v1630_v39 = vpack.c.bf16 %v1620_v11, %v1620_v11  ;;  %v3143_v11 = vld [vmem:[%s4224_s4 + $0x1f8] sm:$0xff]  }
 0x263   :  { %v3308_v24 = vpop.eup %3307  ;;  %v4029_v50 = vpop.f32.mrf.mxu1 }
 0x264   :  { %v1602_v0 = vmul.f32 0.5, %v3308_v24  ;;  %v1586_v63 = vmul.f32 0.5, %v4029_v50  ;;  %2312 = vmatprep.mubr.bf16.mxu1 %v1630_v39  ;;  %v3144_v39 = vld [vmem:[%s4224_s4 + $0x258] sm:$0xff]  }
 0x265   :  { %v1535_v4 = vpop.f32.mrf.mxu1  ;;  %2313 = vmatmul.mubr.bf16.vlgmr.msra.gmra.mxu1 %v1629_v15 }
 0x266   :  { %v1612_v51 = vadd.f32 0.5, %v1602_v0  ;;  %2835 = vmatpush3.bf16.msra.mxu1 %v3116_v45  ;;  %3315 = vtanh.f32 %v1586_v63  ;;  %v3146_v0 = vld [vmem:[%s4224_s4 + $0x218] sm:$0xff]   ;;  %v3148_v4 = vld [vmem:[%s4224_s4 + $0x250] sm:$0xff]  }
 0x267   :  { %v1536_v43 = vpop.f32.mrf.mxu1  ;;  %2836 = vmatprep.subr.bf16.mxu1 %v3119_v61  ;;  %v1585_v61 = vmul.f32 0.5, %v4023_v31 }
 0x268   :  { %v1622_v9 = vmul.f32 %v1612_v51, %v1451_v17  ;;  %v3134_v17 = vld [vmem:[%s4224_s4 + $0x230] sm:$0xff]  }
 0x269   :  { %v3310_v36 = vpop.eup %3309  ;;  %v4041_v48 = vpop.f32.mrf.mxu1  ;;  %v3150_v43 = vld [vmem:[%s4224_s4 + $0x210] sm:$0xff]  }
 0x26a   :  { %v1632_v16 = vpack.c.bf16 %v1622_v9, %v1622_v9  ;;  %v1603_v29 = vmul.f32 0.5, %v3310_v36  ;;  %2837 = vmatpush3.bf16.msra.mxu1 %v3120_v6  ;;  %v1587_v41 = vmul.f32 0.5, %v4041_v48  ;;  %v3149_v6 = vld [vmem:[%s4224_s4 + $0x1b0] sm:$0xff]   ;;  %v3152_v36 = vld [vmem:[%s4224_s4 + $0x248] sm:$0xff]  }
 0x26b   :  { %v3312_v12 = vpop.eup %3311  ;;  %v4046_v14 = vpop.f32.mrf.mxu1  ;;  %2838 = vmatprep.subr.bf16.mxu1 %v3121_v47  ;;  %v3151_v47 = vld [vmem:[%s4224_s4 + $0x1e8] sm:$0xff]  }
 0x26c   :  { %v1613_v13 = vadd.f32 0.5, %v1603_v29  ;;  %v1604_v8 = vmul.f32 0.5, %v3312_v12  ;;  %v1588_v57 = vmul.f32 0.5, %v4046_v14  ;;  %2352 = vmatprep.mubr.bf16.mxu1 %v1632_v16  ;;  %v3314_v60 = vpop.eup %3313  ;;  %v3153_v16 = vld [vmem:[%s4224_s4 + $0x1a8] sm:$0xff]  }
 0x26d   :  { %v1576_v28 = vpop.f32.mrf.mxu1  ;;  %v1601_v21 = vmul.f32 0.5, %v3314_v60  ;;  %v3154_v29 = vld [vmem:[%s4224_s4 + $0x208] sm:$0xff]   ;;  %v3168_v60 = vld [vmem:[%s4225_s5 + $0x30] sm:$0xff]  }
 0x26e   :  { %v1614_v22 = vadd.f32 0.5, %v1604_v8  ;;  %3317 = vtanh.f32 %v1588_v57  ;;  %2839 = vmatpush3.bf16.msra.mxu1 %v3122_v2  ;;  %v1623_v25 = vmul.f32 %v1613_v13, %v1490_v5  ;;  %v3137_v5 = vld [vmem:[%s4224_s4 + $0x88] sm:$0xff]   ;;  %v3155_v2 = vld [vmem:[%s4224_s4 + $0x1e0] sm:$0xff]   ;;  %v3159_v8 = vld [vmem:[%s4224_s4 + $0x1d8] sm:$0xff]  }
 0x26f   :  { %v1577_v56 = vpop.f32.mrf.mxu1  ;;  %2840 = vmatprep.subr.bf16.mxu1 %v3123_v19  ;;  %3319 = vtanh.f32 %v1587_v41  ;;  %v1611_v42 = vadd.f32 0.5, %v1601_v21  ;;  %v3157_v19 = vld [vmem:[%s4224_s4 + $0x1a0] sm:$0xff]   ;;  %v3160_v28 = vld [vmem:[%s4224_s4 + $0x198] sm:$0xff]  }
 0x270   :  { %v1624_v53 = vmul.f32 %v1614_v22, %v1492_v46  ;;  %v1633_v18 = vpack.c.bf16 %v1623_v25, %v1623_v25  ;;  %v3139_v46 = vld [vmem:[%s4224_s4 + $0xc0] sm:$0xff]   ;;  %3321 = vtanh.f32 %v1585_v61  ;;  %v3161_v22 = vld [vmem:[%s4224_s4 + $0x1d0] sm:$0xff]  }
 0x271   :  { %v1621_v3 = vmul.f32 %v1611_v42, %v4021_v38  ;;  %v3145_v38 = vld [vmem:[%s4224_s4 + $0x1b8] sm:$0xff]   ;;  %v3158_v13 = vld [vmem:[%s4224_s4 + $0x200] sm:$0xff]  }
 0x272   :  { %v1634_v40 = vpack.c.bf16 %v1624_v53, %v1624_v53  ;;  %2841 = vmatpush3.bf16.msra.mxu1 %v3125_v54  ;;  %v3164_v53 = vld [vmem:[%s4224_s4 + $0x188] sm:$0xff]   ;;  %v3170_v41 = vld [vmem:[%s4225_s5 + $0x20] sm:$0xff]  }
 0x273   :  { %2842 = vmatprep.subr.bf16.mxu1 %v3127_v23  ;;  %v3316_v30 = vpop.eup %3315  ;;  %v1631_v7 = vpack.c.bf16 %v1621_v3, %v1621_v3  ;;  %v3163_v23 = vld [vmem:[%s4224_s4 + $0x1c8] sm:$0xff]   ;;  %v3174_v21 = vld [vmem:[%s4225_s5] sm:$0xff]  }
 0x274   :  { %2392 = vmatprep.mubr.bf16.mxu0 %v1634_v40  ;;  %v1606_v59 = vmul.f32 0.5, %v3316_v30  ;;  %v3171_v30 = vld [vmem:[%s4225_s5 + $0x18] sm:$0xff]  }
 0x275   :  { %2393 = vmatmul.mubr.bf16.vlgmr.msra.gmra.mxu0 %v1633_v18 }
 0x276   :  { %2843 = vmatpush3.bf16.msra.mxu1 %v3129_v10  ;;  %2901 = vmatpush3.bf16.msra.mxu0 %v3130_v32  ;;  %v1616_v37 = vadd.f32 0.5, %v1606_v59  ;;  %v3165_v10 = vld [vmem:[%s4224_s4 + $0x1c0] sm:$0xff]  }
 0x277   :  { %2844 = vmatprep.subr.bf16.mxu1 %v3131_v26  ;;  %2902 = vmatprep.subr.bf16.mxu0 %v3132_v27  ;;  %v3166_v32 = vld [vmem:[%s4224_s4 + $0x180] sm:$0xff]   ;;  %v3167_v27 = vld [vmem:[%s4225_s5 + $0x38] sm:$0xff]  }
 0x278   :  { %v1626_v45 = vmul.f32 %v1616_v37, %v4029_v50  ;;  %v3147_v50 = vld [vmem:[%s4224_s4 + $0x1f0] sm:$0xff]  }
 0x27a   :  { %2845 = vmatpush3.bf16.msra.mxu1 %v3133_v52  ;;  %2903 = vmatpush3.bf16.msra.mxu0 %v3134_v17  ;;  %v1636_v63 = vpack.c.bf16 %v1626_v45, %v1626_v45  ;;  %v3172_v52 = vld [vmem:[%s4225_s5 + $0x10] sm:$0xff]   ;;  %v3173_v17 = vld [vmem:[%s4225_s5 + $0x8] sm:$0xff]  }
 0x27b   :  { %v3318_v62 = vpop.eup %3317  ;;  %2846 = vmatprep.subr.bf16.mxu1 %v3135_v35  ;;  %2904 = vmatprep.subr.bf16.mxu0 %v3136_v44 }
 0x27c   :  { %v1608_v49 = vmul.f32 0.5, %v3318_v62  ;;  %v3320_v51 = vpop.eup %3319 }
 0x27d   :  { %v1607_v9 = vmul.f32 0.5, %v3320_v51  ;;  %v3322_v54 = vpop.eup %3321 }
 0x27e   :  { %v1618_v55 = vadd.f32 0.5, %v1608_v49  ;;  %2847 = vmatpush3.bf16.msra.mxu1 %v3137_v5  ;;  %2905 = vmatpush3.bf16.msra.mxu0 %v3138_v1  ;;  %v1605_v56 = vmul.f32 0.5, %v3322_v54 }
 0x27f   :  { %2848 = vmatprep.subr.bf16.mxu1 %v3139_v46  ;;  %2906 = vmatprep.subr.bf16.mxu0 %v3140_v33  ;;  %v1617_v12 = vadd.f32 0.5, %v1607_v9 }
 0x280   :  { %v1628_v24 = vmul.f32 %v1618_v55, %v4046_v14  ;;  %v3156_v14 = vld [vmem:[%s4224_s4 + $0x240] sm:$0xff]   ;;  %v1615_v40 = vadd.f32 0.5, %v1605_v56 }
 0x281   :  { %v1627_v57 = vmul.f32 %v1617_v12, %v4041_v48  ;;  %v3162_v48 = vld [vmem:[%s4224_s4 + $0x190] sm:$0xff]  }
 0x282   :  { %v1638_v15 = vpack.c.bf16 %v1628_v24, %v1628_v24  ;;  %2849 = vmatpush3.bf16.msra.mxu1 %v3141_v20  ;;  %2907 = vmatpush3.bf16.msra.mxu0 %v3142_v58  ;;  %v1625_v18 = vmul.f32 %v1615_v40, %v4023_v31  ;;  %v3169_v31 = vld [vmem:[%s4225_s5 + $0x28] sm:$0xff]  }
 0x283   :  { %2878 = vmatprep.subr.bf16.mxu1 %v3143_v11  ;;  %2908 = vmatprep.subr.bf16.mxu0 %v3144_v39  ;;  %v1637_v25 = vpack.c.bf16 %v1627_v57, %v1627_v57 }
 0x284   :  { %2472 = vmatprep.mubr.bf16.mxu0 %v1638_v15  ;;  %v1635_v26 = vpack.c.bf16 %v1625_v18, %v1625_v18 }
 0x285   :  { %2353 = vmatmul.mubr.bf16.vlgmr.msra.gmra.mxu1 %v1631_v7 }
 0x286   :  { %2879 = vmatpush3.bf16.msra.mxu1 %v3145_v38  ;;  %2432 = vmatprep.mubr.bf16.mxu1 %v1636_v63 }
 0x287   :  { %2909 = vmatpush3.bf16.msra.mxu0 %v3146_v0  ;;  %2880 = vmatprep.subr.bf16.mxu1 %v3147_v50 }
 0x288   :  { %2910 = vmatprep.subr.bf16.mxu0 %v3148_v4 }
 0x28a   :  { %2881 = vmatpush3.bf16.msra.mxu1 %v3149_v6 }
 0x28b   :  { %2911 = vmatpush3.bf16.msra.mxu0 %v3150_v43  ;;  %2882 = vmatprep.subr.bf16.mxu1 %v3151_v47 }
 0x28c   :  { %2912 = vmatprep.subr.bf16.mxu0 %v3152_v36  ;;  %v2769_v36 = vld [vmem:[%s4227_s6] ss:$0 sm:$0xff] }
 0x28e   :  { %2883 = vmatpush3.bf16.msra.mxu1 %v3153_v16 }
 0x28f   :  { %2913 = vmatpush3.bf16.msra.mxu0 %v3154_v29  ;;  %2884 = vmatprep.subr.bf16.mxu1 %v3155_v2 }
 0x290   :  { %2914 = vmatprep.subr.bf16.mxu0 %v3156_v14 }
 0x292   :  { %2885 = vmatpush3.bf16.msra.mxu1 %v3157_v19 }
 0x293   :  { %2915 = vmatpush3.bf16.msra.mxu0 %v3158_v13  ;;  %2886 = vmatprep.subr.bf16.mxu1 %v3159_v8 }
 0x296   :  { %2473 = vmatmul.mubr.bf16.vlgmr.msra.gmra.mxu0 %v1637_v25  ;;  %2887 = vmatpush3.bf16.msra.mxu1 %v3160_v28 }
 0x297   :  { %2888 = vmatprep.subr.bf16.mxu1 %v3161_v22 }
 0x29a   :  { %2889 = vmatpush3.bf16.msra.mxu1 %v3162_v48 }
 0x29b   :  { %2890 = vmatprep.subr.bf16.mxu1 %v3163_v23 }
 0x29e   :  { %2891 = vmatpush3.bf16.msra.mxu1 %v3164_v53 }
 0x29f   :  { %2892 = vmatprep.subr.bf16.mxu1 %v3165_v10 }
 0x2a2   :  { %2893 = vmatpush3.bf16.msra.mxu1 %v3166_v32 }
 0x2a3   :  { %2999 = vmatprep.subr.bf16.mxu1 %v3324_v34 }
 0x2a5   :  { %2433 = vmatmul.mubr.bf16.vlgmr.msra.gmra.mxu1 %v1635_v26 }
 0x2a6   :  { %3000 = vmatpush3.bf16.msra.mxu1 %v3167_v27  ;;  %3015 = vmatprep.mubr.msk.bf16.mxu1 %vm3326_vm11, %v3324_v34 }
 0x2a7   :  { %3001 = vmatprep.subr.bf16.mxu1 %v3324_v34 }
 0x2aa   :  { %3002 = vmatpush3.bf16.msra.mxu1 %v3168_v60 }
 0x2ab   :  { %3003 = vmatprep.subr.bf16.mxu1 %v3324_v34 }
 0x2ae   :  { %3004 = vmatpush3.bf16.msra.mxu1 %v3169_v31 }
 0x2af   :  { %3005 = vmatprep.subr.bf16.mxu1 %v3324_v34 }
 0x2b2   :  { %3006 = vmatpush3.bf16.msra.mxu1 %v3170_v41 }
 0x2b3   :  { %3007 = vmatprep.subr.bf16.mxu1 %v3324_v34 }
 0x2b6   :  { %3008 = vmatpush3.bf16.msra.mxu1 %v3171_v30 }
 0x2b7   :  { %3009 = vmatprep.subr.bf16.mxu1 %v3324_v34 }
 0x2ba   :  { %3010 = vmatpush3.bf16.msra.mxu1 %v3172_v52 }
 0x2bb   :  { %3011 = vmatprep.subr.bf16.mxu1 %v3324_v34 }
 0x2be   :  { %3012 = vmatpush3.bf16.msra.mxu1 %v3173_v17 }
 0x2bf   :  { %3013 = vmatprep.subr.bf16.mxu1 %v3324_v34  ;;  %v1799_v34 = vld [vmem:[%s4226_s1] sm:$0xff] }
 0x2c2   :  { %3014 = vmatpush3.bf16.msra.mxu1 %v3174_v21 }
 0x325   :  { %v2828_v35 = vpop.f32.mrf.mxu1 }
 0x327   :  { %v2829_v44 = vpop.f32.mrf.mxu1 }
 0x328   :  { %v2830_v39 = vadd.f32 %v2829_v44, %v2828_v35 }
 0x329   :  { %v2831_v59 = vpop.f32.mrf.mxu1 }
 0x32a   :  { %v2315_v24 = vadd.f32 %v2830_v39, %v1799_v34 }
 0x32b   :  { %v2832_v5 = vpop.f32.mrf.mxu1 }
 0x335   :  { %v2872_v1 = vpop.f32.mrf.mxu0 }
 0x337   :  { %v2873_v62 = vpop.f32.mrf.mxu0 }
 0x338   :  { %v2874_v7 = vadd.f32 %v2873_v62, %v2872_v1 }
 0x339   :  { %v2875_v42 = vpop.f32.mrf.mxu0 }
 0x33b   :  { %v2876_v46 = vpop.f32.mrf.mxu0 }
 0x345   :  { %v2850_v33 = vpop.f32.mrf.mxu1 }
 0x347   :  { %v2851_v37 = vpop.f32.mrf.mxu1 }
 0x348   :  { %v2852_v45 = vadd.f32 %v2851_v37, %v2850_v33 }
 0x349   :  { %v2853_v49 = vpop.f32.mrf.mxu1 }
 0x34a   :  { %v2355_v15 = vadd.f32 %v2852_v45, %v2315_v24 }
 0x34b   :  { %v2854_v55 = vpop.f32.mrf.mxu1 }
 0x34c   :  { %v2395_v0 = vadd.f32 %v2874_v7, %v2355_v15 }
 0x356   :  { %v2916_v20 = vpop.f32.mrf.mxu0 }
 0x358   :  { %v2917_v58 = vpop.f32.mrf.mxu0 }
 0x359   :  { %v2918_v4 = vadd.f32 %v2917_v58, %v2916_v20 }
 0x35a   :  { %v2919_v3 = vpop.f32.mrf.mxu0 }
 0x35c   :  { %v2920_v11 = vpop.f32.mrf.mxu0 }
 0x365   :  { %v2894_v38 = vpop.f32.mrf.mxu1 }
 0x367   :  { %v2895_v61 = vpop.f32.mrf.mxu1 }
 0x368   :  { %v2896_v50 = vadd.f32 %v2895_v61, %v2894_v38 }
 0x369   :  { %v2897_v63 = vpop.f32.mrf.mxu1 }
 0x36a   :  { %v2435_v51 = vadd.f32 %v2896_v50, %v2395_v0 }
 0x36b   :  { %v2898_v6 = vpop.f32.mrf.mxu1 }
 0x36c   :  { %v2475_v43 = vadd.f32 %v2918_v4, %v2435_v51 }
 0x36e   :  { %v2480_v47 = vmax.f32 %v2475_v43, 0.0 }
 0x370   :  { %v2481_v9 = vpack.c.bf16 %v2480_v47, %v2480_v47 }
 0x372   :  { %3016 = vmatmul.mubr.bf16.vlgmr.msra.gmra.mxu1 %v2481_v9 }
 0x432   :  { %v2587_v16 = vpop.f32.mrf.mxu1 }
 0x433   :  { %v2588_v29 = vadd.f32 %v2769_v36, %v2587_v16 }
 0x434   :  { %v3017_v2 = vpop.f32.mrf.mxu1 }
 0x435   :  { %2593 = vst [vmem:[%s4228_s7] sm:$0xff] %v2588_v29 }
 0x436   :  { %v2590_v12 = vpop.f32.mrf.mxu1 }
 0x438   :  { %v3018_v14 = vpop.f32.mrf.mxu1 }

</bundles_post_ra>
